<compile_context>
chip_gen: v6e
topology: v6e:2x2x1
jax: 0.10.0
libtpu: 0.0.40
codegen_flags: <defaults>
</compile_context>

<pallas_src>
import jax
import jax.numpy as jnp
from jax.experimental import pallas as pl
from jax.experimental.pallas import tpu as pltpu


def _round_up(x, m):
    return ((x + m - 1) // m) * m


# ---------------------------------------------------------------------------
# Per-generation configuration
# ---------------------------------------------------------------------------

def _arch_config():
    """Returns (tm_default, vmem_limit_bytes, gelu_bf16_default)."""
    mib = 1024 * 1024
    try:
        vmem_cap = int(pltpu.get_tpu_info().vmem_capacity_bytes)
    except Exception:
        vmem_cap = 64 * mib                       # conservative fallback
    try:
        kind = jax.devices()[0].device_kind.lower()
    except Exception:
        kind = ""
    # v5e VPU/EUP are f32-only; v6e/v7x have bf16 elementwise + bf16 EUP tanh.
    gelu_bf16 = ("v6" in kind) or ("v7" in kind)
    if vmem_cap >= 100 * mib:                     # v5e / v6e: 128 MiB physical VMEM
        tm, want = 512, 100 * mib
    else:                                         # v7x: 64 MiB physical VMEM
        tm, want = 256, 48 * mib
    vmem_limit = min(want, max(32 * mib, vmem_cap - 16 * mib))
    return tm, vmem_limit, gelu_bf16


_SINGLE_BUFFER_SUPPORTED = None


def _single_buffer_supported():
    """Probe once whether pipeline_mode=pl.Buffered(1) lowers on this build."""
    global _SINGLE_BUFFER_SUPPORTED
    if _SINGLE_BUFFER_SUPPORTED is not None:
        return _SINGLE_BUFFER_SUPPORTED
    try:
        def _copy(x_ref, o_ref):
            o_ref[...] = x_ref[...]

        probe = pl.pallas_call(
            _copy,
            out_shape=jax.ShapeDtypeStruct((8, 128), jnp.float32),
            grid=(2,),
            in_specs=[pl.BlockSpec((8, 128), lambda i: (0, 0),
                                   pipeline_mode=pl.Buffered(1))],
            out_specs=pl.BlockSpec((8, 128), lambda i: (0, 0)),
        )
        jax.jit(probe).lower(jax.ShapeDtypeStruct((8, 128), jnp.float32)).compile()
        _SINGLE_BUFFER_SUPPORTED = True
    except Exception:
        _SINGLE_BUFFER_SUPPORTED = False
    return _SINGLE_BUFFER_SUPPORTED


# ---------------------------------------------------------------------------
# Fused Pallas kernel: patch-embed + n_blocks x (LN -> MLP -> residual)
# ---------------------------------------------------------------------------

def _make_fused_backbone_kernel(n_blocks, gelu_bf16):
    def kernel(*refs):
        x_ref, we_ref, be_ref = refs[:3]
        blk_refs = refs[3:3 + 6 * n_blocks]
        out_refs = refs[3 + 6 * n_blocks:]

        # Patch embed: cast the f32 token tile to bf16 in-register (no HBM copy) and
        # contract over the true K = C*p*p extent (MXU lanes padded internally).
        h = jnp.dot(x_ref[...].astype(jnp.bfloat16), we_ref[...],
                    preferred_element_type=jnp.float32) + be_ref[...]

        for i in range(n_blocks):
            g_ref, beta_ref, w1_ref, b1_ref, w2_ref, b2_ref = blk_refs[6 * i:6 * i + 6]

            # LayerNorm in f32; hoist d = h - mu and reuse for var and xn.
            d = h - jnp.mean(h, axis=-1, keepdims=True)
            var = jnp.mean(d * d, axis=-1, keepdims=True)
            xn = d * jax.lax.rsqrt(var + 1e-6) * g_ref[...] + beta_ref[...]

            # MLP: bf16 MXU operands, f32 accumulation.
            h1 = jnp.dot(xn.astype(jnp.bfloat16), w1_ref[...],
                         preferred_element_type=jnp.float32) + b1_ref[...]

            # GELU (tanh approx).  bf16 tanh path on v6e/v7x (bf16 EUP), f32 on v5e;
            # the residual accumulate below stays f32 either way.
            if gelu_bf16:
                hb = h1.astype(jnp.bfloat16)
                t = jnp.tanh(0.7978845608028654 * (hb + 0.044715 * (hb * hb * hb)))
                act = (0.5 * h1 * (1.0 + t.astype(jnp.float32))).astype(jnp.bfloat16)
            else:
                t = jnp.tanh(0.7978845608028654 * (h1 + 0.044715 * (h1 * h1 * h1)))
                act = (0.5 * h1 * (1.0 + t)).astype(jnp.bfloat16)

            h = h + jnp.dot(act, w2_ref[...],
                            preferred_element_type=jnp.float32) + b2_ref[...]
            out_refs[i][...] = h.astype(out_refs[i].dtype)

    return kernel


# ---------------------------------------------------------------------------
# Wrapper: one pallas_call over token tiles
# ---------------------------------------------------------------------------

def fused_backbone_tokens(xp, params, *, tm=None, vmem_limit_bytes=None,
                          feature_dtype=jnp.bfloat16, gelu_bf16=None,
                          single_buffer_weights=True):
    """xp: (M, K) f32 patch tokens.  Returns list of n_blocks (M, D) features."""
    M, K = xp.shape
    D = params["w_embed"].shape[1]
    Dh = params["blocks"][0]["w1"].shape[1]
    n_blocks = len(params["blocks"])

    tm_def, vmem_def, gelu_def = _arch_config()
    tm = tm_def if tm is None else tm
    vmem_limit_bytes = vmem_def if vmem_limit_bytes is None else vmem_limit_bytes
    gelu_bf16 = gelu_def if gelu_bf16 is None else gelu_bf16

    # Token tiling: >= 16 rows (bf16 sublane packing of the outputs) and, when M
    # allows, at least two grid steps so the "parallel" axis can use both v7x cores.
    min_rows = 16
    if M >= 2 * min_rows:
        tm = min(tm, _round_up(pl.cdiv(M, 2), min_rows))
    tm = max(min_rows, min(tm, _round_up(M, min_rows)))
    grid = (pl.cdiv(M, tm),)

    # Grid-invariant weight/bias blocks: constant index_map (fetched once); single-
    # buffer them when the build supports Buffered(1) to free VMEM (key on v7x).
    use_single = single_buffer_weights and _single_buffer_supported()
    w_kwargs = dict(pipeline_mode=pl.Buffered(1)) if use_single else {}

    def w_spec(shape):
        return pl.BlockSpec(shape, lambda i: (0,) * len(shape), **w_kwargs)

    inputs = [xp, params["w_embed"].astype(jnp.bfloat16), params["b_embed"]]
    in_specs = [
        pl.BlockSpec((tm, K), lambda i: (i, 0)),   # full-K block: no 48->128 HBM pad
        w_spec((K, D)),
        w_spec((1, D)),
    ]
    for blk in params["blocks"]:
        inputs += [blk["gamma"], blk["beta"],
                   blk["w1"].astype(jnp.bfloat16), blk["b1"],
                   blk["w2"].astype(jnp.bfloat16), blk["b2"]]
        in_specs += [w_spec((1, D)), w_spec((1, D)),
                     w_spec((D, Dh)), w_spec((1, Dh)),
                     w_spec((Dh, D)), w_spec((1, D))]

    out_shape = tuple(jax.ShapeDtypeStruct((M, D), feature_dtype)
                      for _ in range(n_blocks))
    out_specs = [pl.BlockSpec((tm, D), lambda i: (i, 0)) for _ in range(n_blocks)]

    out_bytes = jnp.dtype(feature_dtype).itemsize
    flops = 2 * M * K * D + n_blocks * 2 * M * (D * Dh + Dh * D)
    transcendentals = n_blocks * M * (Dh + 1)          # tanh + rsqrt
    weight_bytes = (K * D * 2 + D * 4
                    + n_blocks * (2 * D * Dh * 2 + (3 * D + Dh) * 4))
    bytes_accessed = M * K * 4 + weight_bytes + n_blocks * M * D * out_bytes

    feats = pl.pallas_call(
        _make_fused_backbone_kernel(n_blocks, gelu_bf16),
        out_shape=out_shape,
        grid_spec=pltpu.PrefetchScalarGridSpec(
            num_scalar_prefetch=0,
            grid=grid,
            in_specs=in_specs,
            out_specs=out_specs),
        compiler_params=pltpu.CompilerParams(
            dimension_semantics=("parallel",),
            vmem_limit_bytes=vmem_limit_bytes),
        cost_estimate=pl.CostEstimate(
            flops=flops,
            transcendentals=transcendentals,
            bytes_accessed=bytes_accessed),
    )(*inputs)

    return list(feats)                                  # already exactly (M, D)


# ---------------------------------------------------------------------------
# Synthetic backbone + VTMImageBackbone forward (forward_6d_as_4d)
# ---------------------------------------------------------------------------

def backbone_forward_4d(x4d, params, patch, **kw):
    """x4d: (M4, C, H, W) NCHW.  Returns list of features (M4, P, D)."""
    M4, C, H, W = x4d.shape
    p = patch
    # Non-overlapping conv patch-embed == im2col + matmul (tokens stay f32, true K).
    xp = x4d.reshape(M4, C, H // p, p, W // p, p)
    xp = xp.transpose(0, 2, 4, 1, 3, 5).reshape(M4 * (H // p) * (W // p), C * p * p)
    feats = fused_backbone_tokens(xp, params, **kw)
    P = (H // p) * (W // p)
    return [f.reshape(M4, P, f.shape[-1]) for f in feats]


def vtm_image_backbone_forward(x6d, params, patch=4, t_idx=None, **kw):
    """forward_6d_as_4d(backbone, x, t_idx, get_features=True) semantics."""
    # TODO(synk): t_idx (task-conditioned bias of the real wrapped backbone) is unused.
    B, T, N, C, H, W = x6d.shape
    x4d = x6d.reshape(B * T * N, C, H, W)
    feats = backbone_forward_4d(x4d, params, patch, **kw)
    return [f.reshape(B, T, N, f.shape[1], f.shape[2]) for f in feats]


# ---------------------------------------------------------------------------
# Deterministic parameter init
# ---------------------------------------------------------------------------

def init_params(key, in_dim, dim, hidden, n_blocks):
    keys = jax.random.split(key, 1 + 2 * n_blocks)
    params = {
        "w_embed": jax.random.normal(keys[0], (in_dim, dim), jnp.float32) / jnp.sqrt(in_dim),
        "b_embed": jnp.zeros((1, dim), jnp.float32),
        "blocks": [],
    }
    k = 1
    for _ in range(n_blocks):
        params["blocks"].append({
            "gamma": jnp.ones((1, dim), jnp.float32),
            "beta": jnp.zeros((1, dim), jnp.float32),
            "w1": jax.random.normal(keys[k], (dim, hidden), jnp.float32) / jnp.sqrt(dim),
            "b1": jnp.zeros((1, hidden), jnp.float32),
            "w2": jax.random.normal(keys[k + 1], (hidden, dim), jnp.float32) / jnp.sqrt(hidden),
            "b2": jnp.zeros((1, dim), jnp.float32),
        })
        k += 2
    return params


# ---------------------------------------------------------------------------
# Pure-JAX reference (bf16 MXU operands, f32 LayerNorm/GELU/accumulate)
# ---------------------------------------------------------------------------

def _ref_forward(x6d, params, patch):
    B, T, N, C, H, W = x6d.shape
    p = patch
    x4d = x6d.reshape(B * T * N, C, H, W)
    xp = x4d.reshape(B * T * N, C, H // p, p, W // p, p)
    xp = xp.transpose(0, 2, 4, 1, 3, 5).reshape(-1, C * p * p)
    h = jnp.dot(xp.astype(jnp.bfloat16), params["w_embed"].astype(jnp.bfloat16),
                preferred_element_type=jnp.float32) + params["b_embed"]
    feats = []
    P = (H // p) * (W // p)
    for blk in params["blocks"]:
        d = h - jnp.mean(h, -1, keepdims=True)
        var = jnp.mean(d * d, -1, keepdims=True)
        xn = d * jax.lax.rsqrt(var + 1e-6) * blk["gamma"] + blk["beta"]
        h1 = jnp.dot(xn.astype(jnp.bfloat16), blk["w1"].astype(jnp.bfloat16),
                     preferred_element_type=jnp.float32) + blk["b1"]
        h1 = 0.5 * h1 * (1.0 + jnp.tanh(0.7978845608028654 * (h1 + 0.044715 * h1 * h1 * h1)))
        h = h + jnp.dot(h1.astype(jnp.bfloat16), blk["w2"].astype(jnp.bfloat16),
                        preferred_element_type=jnp.float32) + blk["b2"]
        feats.append(h.reshape(B, T, N, P, -1))
    return feats


# ---------------------------------------------------------------------------
# Main
# ---------------------------------------------------------------------------

if __name__ == "__main__":
    B, T, N, C, H, W = 1, 2, 2, 3, 16, 16
    patch = 4
    # D and Dh multiples of 256 so the MLP contractions fill the v6e/v7x MXU.
    dim, hidden, n_blocks = 256, 512, 2

    key = jax.random.PRNGKey(0)
    kx, kp = jax.random.split(key)
    x = jax.random.normal(kx, (B, T, N, C, H, W), jnp.float32)
    params = init_params(kp, C * patch * patch, dim, hidden, n_blocks)

    fwd = jax.jit(lambda x_, p_: vtm_image_backbone_forward(x_, p_, patch=patch, t_idx=None))
    feats = fwd(x, params)
    feats = [jax.block_until_ready(f) for f in feats]

    ref = _ref_forward(x, params, patch)
    for f, r in zip(feats, ref):
        assert f.shape == r.shape, (f.shape, r.shape)
        err = float(jnp.max(jnp.abs(f.astype(jnp.float32) - r)))
        assert jnp.allclose(f.astype(jnp.float32), r, atol=3e-2, rtol=3e-2), err

    print("KERNEL_OK")
</pallas_src>

<mosaic_0001>
module attributes {stable_mosaic.version = 11 : i64} {
  func.func @kernel(%arg0: i32, %arg1: memref<32x48xf32, #tpu.memory_space<vmem>>, %arg2: memref<48x256xbf16, #tpu.memory_space<vmem>>, %arg3: memref<1x256xf32, #tpu.memory_space<vmem>>, %arg4: memref<1x256xf32, #tpu.memory_space<vmem>>, %arg5: memref<1x256xf32, #tpu.memory_space<vmem>>, %arg6: memref<256x512xbf16, #tpu.memory_space<vmem>>, %arg7: memref<1x512xf32, #tpu.memory_space<vmem>>, %arg8: memref<512x256xbf16, #tpu.memory_space<vmem>>, %arg9: memref<1x256xf32, #tpu.memory_space<vmem>>, %arg10: memref<1x256xf32, #tpu.memory_space<vmem>>, %arg11: memref<1x256xf32, #tpu.memory_space<vmem>>, %arg12: memref<256x512xbf16, #tpu.memory_space<vmem>>, %arg13: memref<1x512xf32, #tpu.memory_space<vmem>>, %arg14: memref<512x256xbf16, #tpu.memory_space<vmem>>, %arg15: memref<1x256xf32, #tpu.memory_space<vmem>>, %arg16: memref<32x256xbf16, #tpu.memory_space<vmem>>, %arg17: memref<32x256xbf16, #tpu.memory_space<vmem>>) attributes {dimension_semantics = [#tpu.dimension_semantics<parallel>], iteration_bounds = array<i64: 2>, scalar_prefetch = 0 : i64, scratch_operands = 0 : i64, tpu.core_type = #tpu.core_type<tc>, window_params = [{transform_indices = @transform_0, window_bounds = array<i64: 32, 48>}, {pipeline_mode = #tpu.pipeline_mode<synchronous>, transform_indices = @transform_1, window_bounds = array<i64: 48, 256>}, {pipeline_mode = #tpu.pipeline_mode<synchronous>, transform_indices = @transform_2, window_bounds = array<i64: 1, 256>}, {pipeline_mode = #tpu.pipeline_mode<synchronous>, transform_indices = @transform_3, window_bounds = array<i64: 1, 256>}, {pipeline_mode = #tpu.pipeline_mode<synchronous>, transform_indices = @transform_4, window_bounds = array<i64: 1, 256>}, {pipeline_mode = #tpu.pipeline_mode<synchronous>, transform_indices = @transform_5, window_bounds = array<i64: 256, 512>}, {pipeline_mode = #tpu.pipeline_mode<synchronous>, transform_indices = @transform_6, window_bounds = array<i64: 1, 512>}, {pipeline_mode = #tpu.pipeline_mode<synchronous>, transform_indices = @transform_7, window_bounds = array<i64: 512, 256>}, {pipeline_mode = #tpu.pipeline_mode<synchronous>, transform_indices = @transform_8, window_bounds = array<i64: 1, 256>}, {pipeline_mode = #tpu.pipeline_mode<synchronous>, transform_indices = @transform_9, window_bounds = array<i64: 1, 256>}, {pipeline_mode = #tpu.pipeline_mode<synchronous>, transform_indices = @transform_10, window_bounds = array<i64: 1, 256>}, {pipeline_mode = #tpu.pipeline_mode<synchronous>, transform_indices = @transform_11, window_bounds = array<i64: 256, 512>}, {pipeline_mode = #tpu.pipeline_mode<synchronous>, transform_indices = @transform_12, window_bounds = array<i64: 1, 512>}, {pipeline_mode = #tpu.pipeline_mode<synchronous>, transform_indices = @transform_13, window_bounds = array<i64: 512, 256>}, {pipeline_mode = #tpu.pipeline_mode<synchronous>, transform_indices = @transform_14, window_bounds = array<i64: 1, 256>}, {transform_indices = @transform_15, window_bounds = array<i64: 32, 256>}, {transform_indices = @transform_16, window_bounds = array<i64: 32, 256>}]} {
    %c0 = arith.constant 0 : index
    %c0_0 = arith.constant 0 : index
    %0 = vector.load %arg1[%c0, %c0_0] : memref<32x48xf32, #tpu.memory_space<vmem>>, vector<32x48xf32>
    %1 = arith.truncf %0 : vector<32x48xf32> to vector<32x48xbf16>
    %c0_1 = arith.constant 0 : index
    %c0_2 = arith.constant 0 : index
    %2 = vector.load %arg2[%c0_1, %c0_2] : memref<48x256xbf16, #tpu.memory_space<vmem>>, vector<48x256xbf16>
    %cst = arith.constant dense<0.000000e+00> : vector<32x256xf32>
    %3 = tpu.matmul %1, %2, %cst {dimension_numbers = #tpu.dot_dimension_numbers<[1], [0], [0], [1], [0, 0, 1, 1], [], []>} : vector<32x48xbf16>, vector<48x256xbf16>, vector<32x256xf32> -> vector<32x256xf32>
    %c0_3 = arith.constant 0 : index
    %c0_4 = arith.constant 0 : index
    %4 = vector.load %arg3[%c0_3, %c0_4] : memref<1x256xf32, #tpu.memory_space<vmem>>, vector<1x256xf32>
    %5 = vector.broadcast %4 : vector<1x256xf32> to vector<32x256xf32>
    %6 = arith.addf %3, %5 : vector<32x256xf32>
    %cst_5 = arith.constant dense<0.000000e+00> : vector<32xf32>
    %7 = vector.multi_reduction <add>, %6, %cst_5 [1] : vector<32x256xf32> to vector<32xf32>
    %8 = vector.shape_cast %7 : vector<32xf32> to vector<32x1xf32>
    %cst_6 = arith.constant 2.560000e+02 : f32
    %9 = vector.broadcast %cst_6 : f32 to vector<32x1xf32>
    %10 = arith.divf %8, %9 : vector<32x1xf32>
    %11 = vector.broadcast %10 : vector<32x1xf32> to vector<32x256xf32>
    %12 = arith.subf %6, %11 : vector<32x256xf32>
    %13 = arith.mulf %12, %12 : vector<32x256xf32>
    %cst_7 = arith.constant dense<0.000000e+00> : vector<32xf32>
    %14 = vector.multi_reduction <add>, %13, %cst_7 [1] : vector<32x256xf32> to vector<32xf32>
    %15 = vector.shape_cast %14 : vector<32xf32> to vector<32x1xf32>
    %cst_8 = arith.constant 2.560000e+02 : f32
    %16 = vector.broadcast %cst_8 : f32 to vector<32x1xf32>
    %17 = arith.divf %15, %16 : vector<32x1xf32>
    %cst_9 = arith.constant 9.99999997E-7 : f32
    %18 = vector.broadcast %cst_9 : f32 to vector<32x1xf32>
    %19 = arith.addf %17, %18 : vector<32x1xf32>
    %20 = math.rsqrt %19 : vector<32x1xf32>
    %21 = vector.broadcast %20 : vector<32x1xf32> to vector<32x256xf32>
    %22 = arith.mulf %12, %21 : vector<32x256xf32>
    %c0_10 = arith.constant 0 : index
    %c0_11 = arith.constant 0 : index
    %23 = vector.load %arg4[%c0_10, %c0_11] : memref<1x256xf32, #tpu.memory_space<vmem>>, vector<1x256xf32>
    %24 = vector.broadcast %23 : vector<1x256xf32> to vector<32x256xf32>
    %25 = arith.mulf %22, %24 : vector<32x256xf32>
    %c0_12 = arith.constant 0 : index
    %c0_13 = arith.constant 0 : index
    %26 = vector.load %arg5[%c0_12, %c0_13] : memref<1x256xf32, #tpu.memory_space<vmem>>, vector<1x256xf32>
    %27 = vector.broadcast %26 : vector<1x256xf32> to vector<32x256xf32>
    %28 = arith.addf %25, %27 : vector<32x256xf32>
    %29 = arith.truncf %28 : vector<32x256xf32> to vector<32x256xbf16>
    %c0_14 = arith.constant 0 : index
    %c0_15 = arith.constant 0 : index
    %30 = vector.load %arg6[%c0_14, %c0_15] : memref<256x512xbf16, #tpu.memory_space<vmem>>, vector<256x512xbf16>
    %cst_16 = arith.constant dense<0.000000e+00> : vector<32x512xf32>
    %31 = tpu.matmul %29, %30, %cst_16 {dimension_numbers = #tpu.dot_dimension_numbers<[1], [0], [0], [1], [0, 0, 1, 1], [], []>} : vector<32x256xbf16>, vector<256x512xbf16>, vector<32x512xf32> -> vector<32x512xf32>
    %c0_17 = arith.constant 0 : index
    %c0_18 = arith.constant 0 : index
    %32 = vector.load %arg7[%c0_17, %c0_18] : memref<1x512xf32, #tpu.memory_space<vmem>>, vector<1x512xf32>
    %33 = vector.broadcast %32 : vector<1x512xf32> to vector<32x512xf32>
    %34 = arith.addf %31, %33 : vector<32x512xf32>
    %35 = arith.mulf %34, %34 : vector<32x512xf32>
    %36 = arith.mulf %35, %34 : vector<32x512xf32>
    %cst_19 = arith.constant 4.471500e-02 : f32
    %37 = vector.broadcast %cst_19 : f32 to vector<32x512xf32>
    %38 = arith.mulf %37, %36 : vector<32x512xf32>
    %39 = arith.addf %34, %38 : vector<32x512xf32>
    %cst_20 = arith.constant 0.797884583 : f32
    %40 = vector.broadcast %cst_20 : f32 to vector<32x512xf32>
    %41 = arith.mulf %40, %39 : vector<32x512xf32>
    %42 = math.tanh %41 : vector<32x512xf32>
    %cst_21 = arith.constant 5.000000e-01 : f32
    %43 = vector.broadcast %cst_21 : f32 to vector<32x512xf32>
    %44 = arith.mulf %43, %34 : vector<32x512xf32>
    %cst_22 = arith.constant 1.000000e+00 : f32
    %45 = vector.broadcast %cst_22 : f32 to vector<32x512xf32>
    %46 = arith.addf %45, %42 : vector<32x512xf32>
    %47 = arith.mulf %44, %46 : vector<32x512xf32>
    %48 = arith.truncf %47 : vector<32x512xf32> to vector<32x512xbf16>
    %c0_23 = arith.constant 0 : index
    %c0_24 = arith.constant 0 : index
    %49 = vector.load %arg8[%c0_23, %c0_24] : memref<512x256xbf16, #tpu.memory_space<vmem>>, vector<512x256xbf16>
    %cst_25 = arith.constant dense<0.000000e+00> : vector<32x256xf32>
    %50 = tpu.matmul %48, %49, %cst_25 {dimension_numbers = #tpu.dot_dimension_numbers<[1], [0], [0], [1], [0, 0, 1, 1], [], []>} : vector<32x512xbf16>, vector<512x256xbf16>, vector<32x256xf32> -> vector<32x256xf32>
    %51 = arith.addf %6, %50 : vector<32x256xf32>
    %c0_26 = arith.constant 0 : index
    %c0_27 = arith.constant 0 : index
    %52 = vector.load %arg9[%c0_26, %c0_27] : memref<1x256xf32, #tpu.memory_space<vmem>>, vector<1x256xf32>
    %53 = vector.broadcast %52 : vector<1x256xf32> to vector<32x256xf32>
    %54 = arith.addf %51, %53 : vector<32x256xf32>
    %55 = arith.truncf %54 : vector<32x256xf32> to vector<32x256xbf16>
    %c0_28 = arith.constant 0 : index
    %c0_29 = arith.constant 0 : index
    %56 = vector.load %arg16[%c0_28, %c0_29] : memref<32x256xbf16, #tpu.memory_space<vmem>>, vector<32x256xbf16>
    tpu.vector_store %arg16[%c0_28, %c0_29], %55 {strides = array<i32>} : memref<32x256xbf16, #tpu.memory_space<vmem>>, vector<32x256xbf16>,
    %cst_30 = arith.constant dense<0.000000e+00> : vector<32xf32>
    %57 = vector.multi_reduction <add>, %54, %cst_30 [1] : vector<32x256xf32> to vector<32xf32>
    %58 = vector.shape_cast %57 : vector<32xf32> to vector<32x1xf32>
    %cst_31 = arith.constant 2.560000e+02 : f32
    %59 = vector.broadcast %cst_31 : f32 to vector<32x1xf32>
    %60 = arith.divf %58, %59 : vector<32x1xf32>
    %61 = vector.broadcast %60 : vector<32x1xf32> to vector<32x256xf32>
    %62 = arith.subf %54, %61 : vector<32x256xf32>
    %63 = arith.mulf %62, %62 : vector<32x256xf32>
    %cst_32 = arith.constant dense<0.000000e+00> : vector<32xf32>
    %64 = vector.multi_reduction <add>, %63, %cst_32 [1] : vector<32x256xf32> to vector<32xf32>
    %65 = vector.shape_cast %64 : vector<32xf32> to vector<32x1xf32>
    %cst_33 = arith.constant 2.560000e+02 : f32
    %66 = vector.broadcast %cst_33 : f32 to vector<32x1xf32>
    %67 = arith.divf %65, %66 : vector<32x1xf32>
    %cst_34 = arith.constant 9.99999997E-7 : f32
    %68 = vector.broadcast %cst_34 : f32 to vector<32x1xf32>
    %69 = arith.addf %67, %68 : vector<32x1xf32>
    %70 = math.rsqrt %69 : vector<32x1xf32>
    %71 = vector.broadcast %70 : vector<32x1xf32> to vector<32x256xf32>
    %72 = arith.mulf %62, %71 : vector<32x256xf32>
    %c0_35 = arith.constant 0 : index
    %c0_36 = arith.constant 0 : index
    %73 = vector.load %arg10[%c0_35, %c0_36] : memref<1x256xf32, #tpu.memory_space<vmem>>, vector<1x256xf32>
    %74 = vector.broadcast %73 : vector<1x256xf32> to vector<32x256xf32>
    %75 = arith.mulf %72, %74 : vector<32x256xf32>
    %c0_37 = arith.constant 0 : index
    %c0_38 = arith.constant 0 : index
    %76 = vector.load %arg11[%c0_37, %c0_38] : memref<1x256xf32, #tpu.memory_space<vmem>>, vector<1x256xf32>
    %77 = vector.broadcast %76 : vector<1x256xf32> to vector<32x256xf32>
    %78 = arith.addf %75, %77 : vector<32x256xf32>
    %79 = arith.truncf %78 : vector<32x256xf32> to vector<32x256xbf16>
    %c0_39 = arith.constant 0 : index
    %c0_40 = arith.constant 0 : index
    %80 = vector.load %arg12[%c0_39, %c0_40] : memref<256x512xbf16, #tpu.memory_space<vmem>>, vector<256x512xbf16>
    %cst_41 = arith.constant dense<0.000000e+00> : vector<32x512xf32>
    %81 = tpu.matmul %79, %80, %cst_41 {dimension_numbers = #tpu.dot_dimension_numbers<[1], [0], [0], [1], [0, 0, 1, 1], [], []>} : vector<32x256xbf16>, vector<256x512xbf16>, vector<32x512xf32> -> vector<32x512xf32>
    %c0_42 = arith.constant 0 : index
    %c0_43 = arith.constant 0 : index
    %82 = vector.load %arg13[%c0_42, %c0_43] : memref<1x512xf32, #tpu.memory_space<vmem>>, vector<1x512xf32>
    %83 = vector.broadcast %82 : vector<1x512xf32> to vector<32x512xf32>
    %84 = arith.addf %81, %83 : vector<32x512xf32>
    %85 = arith.mulf %84, %84 : vector<32x512xf32>
    %86 = arith.mulf %85, %84 : vector<32x512xf32>
    %cst_44 = arith.constant 4.471500e-02 : f32
    %87 = vector.broadcast %cst_44 : f32 to vector<32x512xf32>
    %88 = arith.mulf %87, %86 : vector<32x512xf32>
    %89 = arith.addf %84, %88 : vector<32x512xf32>
    %cst_45 = arith.constant 0.797884583 : f32
    %90 = vector.broadcast %cst_45 : f32 to vector<32x512xf32>
    %91 = arith.mulf %90, %89 : vector<32x512xf32>
    %92 = math.tanh %91 : vector<32x512xf32>
    %cst_46 = arith.constant 5.000000e-01 : f32
    %93 = vector.broadcast %cst_46 : f32 to vector<32x512xf32>
    %94 = arith.mulf %93, %84 : vector<32x512xf32>
    %cst_47 = arith.constant 1.000000e+00 : f32
    %95 = vector.broadcast %cst_47 : f32 to vector<32x512xf32>
    %96 = arith.addf %95, %92 : vector<32x512xf32>
    %97 = arith.mulf %94, %96 : vector<32x512xf32>
    %98 = arith.truncf %97 : vector<32x512xf32> to vector<32x512xbf16>
    %c0_48 = arith.constant 0 : index
    %c0_49 = arith.constant 0 : index
    %99 = vector.load %arg14[%c0_48, %c0_49] : memref<512x256xbf16, #tpu.memory_space<vmem>>, vector<512x256xbf16>
    %cst_50 = arith.constant dense<0.000000e+00> : vector<32x256xf32>
    %100 = tpu.matmul %98, %99, %cst_50 {dimension_numbers = #tpu.dot_dimension_numbers<[1], [0], [0], [1], [0, 0, 1, 1], [], []>} : vector<32x512xbf16>, vector<512x256xbf16>, vector<32x256xf32> -> vector<32x256xf32>
    %101 = arith.addf %54, %100 : vector<32x256xf32>
    %c0_51 = arith.constant 0 : index
    %c0_52 = arith.constant 0 : index
    %102 = vector.load %arg15[%c0_51, %c0_52] : memref<1x256xf32, #tpu.memory_space<vmem>>, vector<1x256xf32>
    %103 = vector.broadcast %102 : vector<1x256xf32> to vector<32x256xf32>
    %104 = arith.addf %101, %103 : vector<32x256xf32>
    %105 = arith.truncf %104 : vector<32x256xf32> to vector<32x256xbf16>
    %c0_53 = arith.constant 0 : index
    %c0_54 = arith.constant 0 : index
    %106 = vector.load %arg17[%c0_53, %c0_54] : memref<32x256xbf16, #tpu.memory_space<vmem>>, vector<32x256xbf16>
    tpu.vector_store %arg17[%c0_53, %c0_54], %105 {strides = array<i32>} : memref<32x256xbf16, #tpu.memory_space<vmem>>, vector<32x256xbf16>,
    return
  }
  func.func @transform_0(%arg0: i32) -> (i32, i32) {
    %c0_i32 = arith.constant 0 : i32
    %c0_i32_0 = arith.constant 0 : i32
    return %arg0, %c0_i32 : i32, i32
  }
  func.func @transform_1(%arg0: i32) -> (i32, i32) {
    %c0_i32 = arith.constant 0 : i32
    %c0_i32_0 = arith.constant 0 : i32
    %c0_i32_1 = arith.constant 0 : i32
    return %c0_i32, %c0_i32_0 : i32, i32
  }
  func.func @transform_2(%arg0: i32) -> (i32, i32) {
    %c0_i32 = arith.constant 0 : i32
    %c0_i32_0 = arith.constant 0 : i32
    %c0_i32_1 = arith.constant 0 : i32
    return %c0_i32, %c0_i32_0 : i32, i32
  }
  func.func @transform_3(%arg0: i32) -> (i32, i32) {
    %c0_i32 = arith.constant 0 : i32
    %c0_i32_0 = arith.constant 0 : i32
    %c0_i32_1 = arith.constant 0 : i32
    return %c0_i32, %c0_i32_0 : i32, i32
  }
  func.func @transform_4(%arg0: i32) -> (i32, i32) {
    %c0_i32 = arith.constant 0 : i32
    %c0_i32_0 = arith.constant 0 : i32
    %c0_i32_1 = arith.constant 0 : i32
    return %c0_i32, %c0_i32_0 : i32, i32
  }
  func.func @transform_5(%arg0: i32) -> (i32, i32) {
    %c0_i32 = arith.constant 0 : i32
    %c0_i32_0 = arith.constant 0 : i32
    %c0_i32_1 = arith.constant 0 : i32
    return %c0_i32, %c0_i32_0 : i32, i32
  }
  func.func @transform_6(%arg0: i32) -> (i32, i32) {
    %c0_i32 = arith.constant 0 : i32
    %c0_i32_0 = arith.constant 0 : i32
    %c0_i32_1 = arith.constant 0 : i32
    return %c0_i32, %c0_i32_0 : i32, i32
  }
  func.func @transform_7(%arg0: i32) -> (i32, i32) {
    %c0_i32 = arith.constant 0 : i32
    %c0_i32_0 = arith.constant 0 : i32
    %c0_i32_1 = arith.constant 0 : i32
    return %c0_i32, %c0_i32_0 : i32, i32
  }
  func.func @transform_8(%arg0: i32) -> (i32, i32) {
    %c0_i32 = arith.constant 0 : i32
    %c0_i32_0 = arith.constant 0 : i32
    %c0_i32_1 = arith.constant 0 : i32
    return %c0_i32, %c0_i32_0 : i32, i32
  }
  func.func @transform_9(%arg0: i32) -> (i32, i32) {
    %c0_i32 = arith.constant 0 : i32
    %c0_i32_0 = arith.constant 0 : i32
    %c0_i32_1 = arith.constant 0 : i32
    return %c0_i32, %c0_i32_0 : i32, i32
  }
  func.func @transform_10(%arg0: i32) -> (i32, i32) {
    %c0_i32 = arith.constant 0 : i32
    %c0_i32_0 = arith.constant 0 : i32
    %c0_i32_1 = arith.constant 0 : i32
    return %c0_i32, %c0_i32_0 : i32, i32
  }
  func.func @transform_11(%arg0: i32) -> (i32, i32) {
    %c0_i32 = arith.constant 0 : i32
    %c0_i32_0 = arith.constant 0 : i32
    %c0_i32_1 = arith.constant 0 : i32
    return %c0_i32, %c0_i32_0 : i32, i32
  }
  func.func @transform_12(%arg0: i32) -> (i32, i32) {
    %c0_i32 = arith.constant 0 : i32
    %c0_i32_0 = arith.constant 0 : i32
    %c0_i32_1 = arith.constant 0 : i32
    return %c0_i32, %c0_i32_0 : i32, i32
  }
  func.func @transform_13(%arg0: i32) -> (i32, i32) {
    %c0_i32 = arith.constant 0 : i32
    %c0_i32_0 = arith.constant 0 : i32
    %c0_i32_1 = arith.constant 0 : i32
    return %c0_i32, %c0_i32_0 : i32, i32
  }
  func.func @transform_14(%arg0: i32) -> (i32, i32) {
    %c0_i32 = arith.constant 0 : i32
    %c0_i32_0 = arith.constant 0 : i32
    %c0_i32_1 = arith.constant 0 : i32
    return %c0_i32, %c0_i32_0 : i32, i32
  }
  func.func @transform_15(%arg0: i32) -> (i32, i32) {
    %c0_i32 = arith.constant 0 : i32
    %c0_i32_0 = arith.constant 0 : i32
    return %arg0, %c0_i32 : i32, i32
  }
  func.func @transform_16(%arg0: i32) -> (i32, i32) {
    %c0_i32 = arith.constant 0 : i32
    %c0_i32_0 = arith.constant 0 : i32
    return %arg0, %c0_i32 : i32, i32
  }
}

</mosaic_0001>

<bundles_post_ra>
// kernel: _lambda_.1
= control target key start
LH: loop header
LB: loop body
LE: loop exit
PB: predicated region body
PF: predicated region fallthrough
CT: control target
= control target key end

     0   :  { %s5871_s0 = inlined_call_operand.vmem [shape: f32[64,48], index: 0, kind: input, shape index: {}]   ;;  %s5872_s1 = inlined_call_operand.vmem [shape: bf16[48,256], index: 1, kind: input, shape index: {}]   ;;  %s5873_s2 = inlined_call_operand.vmem [shape: f32[1,256], index: 2, kind: input, shape index: {}]   ;;  %s5874_s3 = inlined_call_operand.vmem [shape: f32[1,256], index: 3, kind: input, shape index: {}]   ;;  %s5875_s4 = inlined_call_operand.vmem [shape: f32[1,256], index: 4, kind: input, shape index: {}]   ;;  %s5876_s5 = inlined_call_operand.vmem [shape: bf16[256,512], index: 5, kind: input, shape index: {}]   ;;  %s5877_s6 = inlined_call_operand.vmem [shape: f32[1,512], index: 6, kind: input, shape index: {}]   ;;  %s5878_s7 = inlined_call_operand.vmem [shape: bf16[512,256], index: 7, kind: input, shape index: {}]   ;;  %s5879_s8 = inlined_call_operand.vmem [shape: f32[1,256], index: 8, kind: input, shape index: {}]   ;;  %s5880_s9 = inlined_call_operand.vmem [shape: f32[1,256], index: 9, kind: input, shape index: {}]   ;;  %s5881_s10 = inlined_call_operand.vmem [shape: f32[1,256], index: 10, kind: input, shape index: {}]   ;;  %s5882_s11 = inlined_call_operand.vmem [shape: bf16[256,512], index: 11, kind: input, shape index: {}]   ;;  %s5883_s12 = inlined_call_operand.vmem [shape: f32[1,512], index: 12, kind: input, shape index: {}]   ;;  %s5884_s13 = inlined_call_operand.vmem [shape: bf16[512,256], index: 13, kind: input, shape index: {}]   ;;  %s5885_s14 = inlined_call_operand.vmem [shape: f32[1,256], index: 14, kind: input, shape index: {}]   ;;  %s5886_s15 = inlined_call_operand.hbm [shape: bf16[64,256], index: 15, kind: output, shape index: {0}]   ;;  %s5887_s16 = inlined_call_operand.hbm [shape: bf16[64,256], index: 16, kind: output, shape index: {1}]  }
   0x1   :  { %5898 = sst [smem:[#allocation14_spill]] %s5871_s0 }
   0x2   :  { %5899 = sst [smem:[#allocation15_spill]] %s5887_s16 }
   0x3   :  { %22 = vsyncpa [#allocation3], 0 }
   0x4   :  { %24 = vsyncpa [#allocation3 + $0x1], 0 }
   0x5   :  { %25 = vsyncpa [#allocation5], 0 }
   0x6   :  { %27 = vsyncpa [#allocation5 + $0x1], 0  ;;  %s4422_s21 = smov 0   ;;  %s4424_s22 = smov 0  }
   0x7   :  { %s4426_s23 = smov 0   ;;  %s4428_s24 = smov 0  }
   0x8 LB: > { %5900 = sst [smem:[#allocation8_spill]] %s4318_s21  ;;  %s4443_s25 = sadd.s32 4294967295, %s4330_s24   ;;  %s4330_s24 = sphi %s4428_s24, %s5916_s24   ;;  %s4326_s23 = sphi %s4426_s23, %s5918_s23   ;;  %s4322_s22 = sphi %s4424_s22, %s5920_s22   ;;  %s4318_s21 = sphi %s4422_s21, %s5919_s21  }
   0x9   : > { %5901 = sst [smem:[#allocation9_spill]] %s4326_s23  ;;  %s3418_s26 = sadd.s32 4294967294, %s4330_s24  }
   0xa   : > { %5902 = sst [smem:[#allocation10_spill]] %s4330_s24  ;;  %s4447_s27 = sadd.s32 1, %s4330_s24  }
   0xb   : > { %5903 = sst [smem:[#allocation11_spill]] %s4447_s27  ;;  %s360_s28 = sadd.s32 1, %s4326_s23 }
   0xc   : > { %s357_s29 = ssub.s32 %s4330_s24, %s4447_s27  ;;  %p370_p0 = scmp.ne.s32.totalorder %s4326_s23, %s4322_s22 }
   0xd   : > { %p358_p1 = scmp.eq.s32.totalorder %s357_s29, 0  ;;  %p371_p2 = scmp.eq.s32.totalorder %s4443_s25, 1 }
   0xe   : > { %p376_p3 = scmp.ne.s32.totalorder %s4322_s22, %s4318_s21  ;;  %p377_p4 = scmp.eq.s32.totalorder %s3418_s26, 1 }
   0xf   : > { %s4458_s30 = scalar_select %p358_p1, %s4326_s23, %s360_s28  }
  0x10   : > { %p4460_p5 = por %p371_p2, %p370_p0  ;;  %p4464_p6 = por %p377_p4, %p376_p3 }
  0x11   : > { %5904 = sst [smem:[#allocation12_spill]] %s4458_s30  ;;  %p3421_p7 = scmp.ge.s32.totalorder %s4330_s24, 1 }
  0x12   : > { %s5906_s17 = scalar_select %p4464_p6, 1, 0 }
  0x13   : > { %p472_p8 = scmp.lt.s32.totalorder %s4330_s24, 3 }
  0x14   : > { %5907 = sst [smem:[#allocation13_spill]] %s5906_s17 }
  0x15   : > { %p473_p9 = pnand %p3421_p7, %p472_p8 }
  0x16   : > { %s3424_s20 = sshll.u32 (!%p473_p9), %s4443_s25, 2  ;;  %s5908_s21 = sld [smem:[#allocation14_spill]] (!%p473_p9) }
  0x17   : > { %476 = sbr.rel (%p473_p9) target bundleno = 1781 (0x6f5), region = 80  ;;  %p528_p10 = scmp.lt.s32.totalorder (!%p473_p9), %s3424_s20, 7 }
  0x18   : > { %s5896_s27 = sshll.u32 (!%p473_p9), %s4443_s25, 9 }
  0x1c   : > { %v3767_v0 = vld [vmem:[%s5872_s1 + $0x24] ss:$8 sps:$4 sm:$0xff]   ;;  %v3769_v1 = vld [vmem:[%s5872_s1 + $0x20] ss:$8 sps:$4 sm:$0xff]   ;;  %v4332_v2 = vmov 0   ;;  %s5922_s20 = smov (!%p528_p10, %s3424_s20), 7  ;;  %v550_v13 = vlaneseq }
  0x1d   : > { %629 = vmatprep.mubr.bf16.mxu0 %v4332_v2  ;;  %607 = vmatprep.subr.bf16.mxu0 %v3767_v0  ;;  %v3770_v3 = vld [vmem:[%s5872_s1 + $0x14] ss:$8 sps:$4 sm:$0xff]   ;;  %v3772_v4 = vld [vmem:[%s5872_s1 + $0x10] ss:$8 sps:$4 sm:$0xff]   ;;  %v3773_v5 = vld [vmem:[%s5872_s1 + $0x4] ss:$8 sps:$4 sm:$0xff]  }
  0x1e   : > { %608 = vmatpush1.bf16.msra.mxu0 %v3769_v1  ;;  %s3425_s26 = sshll.u32 %s5922_s20, 3  ;;  %v3775_v6 = vld [vmem:[%s5872_s1] ss:$8 sps:$4 sm:$0xff]   ;;  %vm590_vm0 = vcmask 392192   ;;  %v4492_v14 = vshrl.u32 %v550_v13, 7  ;;  %s5122_s20 = sand.u32 1, %s4322_s22  }
  0x1f   : > { %609 = vmatprep.subr.bf16.mxu0 %v3770_v3  ;;  %s531_s24 = scalar_lea.vmem %s5908_s21, %s3425_s26  ;;  %v548_v17 = vld [vmem:[%s5873_s2] sm:$0x3]  ;;  %v3776_v40 = vld [vmem:[%s5876_s5 + $0xe4] ss:$16 sps:$4 sm:$0xff]   ;;  %v3778_v41 = vld [vmem:[%s5876_s5 + $0xe8] ss:$16 sps:$4 sm:$0xff]   ;;  %s5768_s26 = scalar_lea.hbm %s5886_s15, %s5896_s27 }
  0x20   : > { %v536_v7 = vld [vmem:[%s531_s24] sm:$0xff]  ;;  %v537_v8 = vld [vmem:[%s531_s24 + $0x8] sm:$0xff]  ;;  %v538_v10 = vld [vmem:[%s531_s24 + $0x10] sm:$0xff]  ;;  %v4495_v15 = vsub.s32 0, %v4492_v14  ;;  %v4498_v16 = vsub.s32 1, %v4492_v14  ;;  %1165 = vmatprep.subr.bf16.mxu1 %v3776_v40  ;;  %s5895_s29 = sshll.u32 %s5122_s20, 5 }
  0x21   : > { %v540_v9 = vpack.c.bf16 %v537_v8, %v536_v7  ;;  %v539_v11 = vld [vmem:[%s531_s24 + $0x18] sm:$0xff]  ;;  %v3781_v43 = vld [vmem:[%s5876_s5 + $0xe0] ss:$16 sps:$4 sm:$0xff]   ;;  %v3782_v44 = vld [vmem:[%s5876_s5 + $0xc4] ss:$16 sps:$4 sm:$0xff]   ;;  %s5141_s18 = scalar_lea.vmem [#allocation2], %s5895_s29 }
  0x22   : > { %610 = vmatpush1.bf16.msra.mxu0 %v3772_v4  ;;  %v541_v12 = vpack.c.bf16 %v539_v11, %v538_v10  ;;  %v553_v18 = vrot.slane %v548_v17, %v4495_v15  ;;  %v557_v19 = vrot.slane %v548_v17, %v4498_v16  ;;  %v3780_v42 = vld [vmem:[%s5876_s5 + $0xec] ss:$16 sps:$4 sm:$0xff]   ;;  %1166 = vmatpush1.bf16.msra.mxu1 %v3781_v43  ;;  %v3784_v46 = vld [vmem:[%s5876_s5 + $0xc8] ss:$16 sps:$4 sm:$0xff]   ;;  %v3787_v47 = vld [vmem:[%s5876_s5 + $0xc0] ss:$16 sps:$4 sm:$0xff]  }
  0x23   : > { %611 = vmatprep.subr.bf16.mxu0 %v3773_v5  ;;  %v3786_v45 = vld [vmem:[%s5876_s5 + $0xcc] ss:$16 sps:$4 sm:$0xff]   ;;  %1167 = vmatprep.subr.bf16.mxu1 %v3782_v44  ;;  %v3788_v48 = vld [vmem:[%s5876_s5 + $0xa4] ss:$16 sps:$4 sm:$0xff]   ;;  %v3790_v50 = vld [vmem:[%s5876_s5 + $0xa8] ss:$16 sps:$4 sm:$0xff]  }
  0x24   : > { %v3792_v49 = vld [vmem:[%s5876_s5 + $0xac] ss:$16 sps:$4 sm:$0xff]   ;;  %v3793_v51 = vld [vmem:[%s5876_s5 + $0xa0] ss:$16 sps:$4 sm:$0xff]   ;;  %v3794_v52 = vld [vmem:[%s5876_s5 + $0x84] ss:$16 sps:$4 sm:$0xff]  }
  0x25   : > { %v3798_v53 = vld [vmem:[%s5876_s5 + $0x8c] ss:$16 sps:$4 sm:$0xff]   ;;  %v3796_v54 = vld [vmem:[%s5876_s5 + $0x88] ss:$16 sps:$4 sm:$0xff]   ;;  %v3799_v55 = vld [vmem:[%s5876_s5 + $0x80] ss:$16 sps:$4 sm:$0xff]  }
  0x26   : > { %612 = vmatpush1.bf16.msra.mxu0 %v3775_v6  ;;  %1168 = vmatpush1.bf16.msra.mxu1 %v3787_v47  ;;  %v3800_v56 = vld [vmem:[%s5876_s5 + $0x64] ss:$16 sps:$4 sm:$0xff]   ;;  %v3804_v57 = vld [vmem:[%s5876_s5 + $0x6c] ss:$16 sps:$4 sm:$0xff]   ;;  %v3802_v58 = vld [vmem:[%s5876_s5 + $0x68] ss:$16 sps:$4 sm:$0xff]  }
  0x27   : > { %1218 = vmatprep.subr.bf16.mxu0 %v3780_v42  ;;  %1169 = vmatprep.subr.bf16.mxu1 %v3788_v48  ;;  %v3805_v59 = vld [vmem:[%s5876_s5 + $0x60] ss:$16 sps:$4 sm:$0xff]   ;;  %v3806_v60 = vld [vmem:[%s5876_s5 + $0x44] ss:$16 sps:$4 sm:$0xff]   ;;  %v3810_v61 = vld [vmem:[%s5876_s5 + $0x4c] ss:$16 sps:$4 sm:$0xff]  }
  0x28   : > { %v3808_v62 = vld [vmem:[%s5876_s5 + $0x48] ss:$16 sps:$4 sm:$0xff]   ;;  %v3811_v63 = vld [vmem:[%s5876_s5 + $0x40] ss:$16 sps:$4 sm:$0xff]   ;;  %v3812_v0 = vld [vmem:[%s5876_s5 + $0x24] ss:$16 sps:$4 sm:$0xff]  }
  0x29   : > { %3432 = vmatmul.mubr.msk.bf16.vlgmr.msra.gmra.mxu0 %vm590_vm0, %v540_v9  ;;  %v3816_v1 = vld [vmem:[%s5876_s5 + $0x2c] ss:$16 sps:$4 sm:$0xff]   ;;  %v3817_v3 = vld [vmem:[%s5876_s5 + $0x20] ss:$16 sps:$4 sm:$0xff]   ;;  %v3818_v4 = vld [vmem:[%s5876_s5 + $0x4] ss:$16 sps:$4 sm:$0xff]  }
  0x2a   : > { %639 = vmatprep.mubr.bf16.mxu0 %v4332_v2  ;;  %1219 = vmatpush1.bf16.msra.mxu0 %v3778_v41  ;;  %v3814_v2 = vld [vmem:[%s5876_s5 + $0x28] ss:$16 sps:$4 sm:$0xff]   ;;  %v3822_v5 = vld [vmem:[%s5876_s5 + $0xc] ss:$16 sps:$4 sm:$0xff]   ;;  %v3823_v7 = vld [vmem:[%s5876_s5] ss:$16 sps:$4 sm:$0xff]  }
  0x2b   : > { %1220 = vmatprep.subr.bf16.mxu0 %v3786_v45  ;;  %1170 = vmatpush1.bf16.msra.mxu1 %v3793_v51  ;;  %v3820_v6 = vld [vmem:[%s5876_s5 + $0x8] ss:$16 sps:$4 sm:$0xff]   ;;  %v3824_v8 = vld [vmem:[%s5876_s5 + $0x1e4] ss:$16 sps:$4 sm:$0xff]   ;;  %v3828_v9 = vld [vmem:[%s5876_s5 + $0x1ec] ss:$16 sps:$4 sm:$0xff]  }
  0x2c   : > { %1171 = vmatprep.subr.bf16.mxu1 %v3794_v52  ;;  %v3826_v10 = vld [vmem:[%s5876_s5 + $0x1e8] ss:$16 sps:$4 sm:$0xff]   ;;  %v3830_v51 = vld [vmem:[%s5876_s5 + $0x1c4] ss:$16 sps:$4 sm:$0xff]   ;;  %v3834_v52 = vld [vmem:[%s5876_s5 + $0x1cc] ss:$16 sps:$4 sm:$0xff]  }
  0x2d   : > { %s3307_s28 = sshll.u32 %s5141_s18, 4  ;;  %s3288_s30 = scalar_lea.sflag [#allocation3], %s5122_s20  ;;  %s5771_s28 = int_to_ptr.vmem [resolvable:$true] %s3307_s28 }
  0x2e   : > { %1221 = vmatpush1.bf16.msra.mxu0 %v3784_v46  ;;  %s4240_s16 = scalar_lea.vmem %s5771_s28, 512  ;;  %s4333_s21 = smov [#allocation2]  }
  0x2f   : > { %1222 = vmatprep.subr.bf16.mxu0 %v3792_v49  ;;  %1172 = vmatpush1.bf16.msra.mxu1 %v3799_v55  ;;  %v3829_v49 = vld [vmem:[%s5876_s5 + $0x1e0] ss:$16 sps:$4 sm:$0xff]   ;;  %v3836_v55 = vld [vmem:[%s5876_s5 + $0x1a4] ss:$16 sps:$4 sm:$0xff]   ;;  %p4241_p11 = scmp.ne.s32.totalorder %s5771_s28, %s4240_s16  ;;  %s4244_s23 = sshll.u32 %s4333_s21, 4  ;;  %s4245_s23 = int_to_ptr.vmem [resolvable:$false] %s4244_s23 }
  0x30   : > { %1173 = vmatprep.subr.bf16.mxu1 %v3800_v56  ;;  %v3840_v56 = vld [vmem:[%s5876_s5 + $0x1ac] ss:$16 sps:$4 sm:$0xff]   ;;  %s4246_s24 = scalar_lea.vmem %s4245_s23, 1024  ;;  %p4247_p0 = scmp.lt.s32.totalorder %s5771_s28, %s4245_s23 }
  0x31   : > { %3433 = vmatmul.mubr.msk.bf16.gmra.mxu0 %vm590_vm0, %v541_v12  ;;  %p4242_p12 = pnand %p4241_p11, %p4460_p5  ;;  %p4248_p1 = scmp.lt.s32.totalorder %s4246_s24, %s4240_s16 }
  0x32   : > { %1223 = vmatpush1.bf16.msra.mxu0 %v3790_v50 }
  0x33   : > { %1224 = vmatprep.subr.bf16.mxu0 %v3798_v53  ;;  %1174 = vmatpush1.bf16.msra.mxu1 %v3805_v59  ;;  %v3832_v53 = vld [vmem:[%s5876_s5 + $0x1c8] ss:$16 sps:$4 sm:$0xff]   ;;  %v3842_v59 = vld [vmem:[%s5876_s5 + $0x184] ss:$16 sps:$4 sm:$0xff]   ;;  %p4243_p13 = pneg %p4242_p12  ;;  %p4249_p2 = por %p4248_p1, %p4247_p0 }
  0x34   : > { %1175 = vmatprep.subr.bf16.mxu1 %v3806_v60  ;;  %v3846_v60 = vld [vmem:[%s5876_s5 + $0x18c] ss:$16 sps:$4 sm:$0xff]  }
  0x35   : > { %p4250_p3 = pnand %p4249_p2, %p4243_p13 }
  0x36   : > { %1225 = vmatpush1.bf16.msra.mxu0 %v3796_v54  ;;  %v3835_v54 = vld [vmem:[%s5876_s5 + $0x1c0] ss:$16 sps:$4 sm:$0xff]  }
  0x37   : > { %1226 = vmatprep.subr.bf16.mxu0 %v3804_v57  ;;  %1176 = vmatpush1.bf16.msra.mxu1 %v3811_v63  ;;  %v3838_v57 = vld [vmem:[%s5876_s5 + $0x1a8] ss:$16 sps:$4 sm:$0xff]   ;;  %v3848_v63 = vld [vmem:[%s5876_s5 + $0x164] ss:$16 sps:$4 sm:$0xff]  }
  0x38   : > { %1177 = vmatprep.subr.bf16.mxu1 %v3812_v0  ;;  %v3852_v0 = vld [vmem:[%s5876_s5 + $0x16c] ss:$16 sps:$4 sm:$0xff]  }
  0x3a   : > { %1227 = vmatpush1.bf16.msra.mxu0 %v3802_v58  ;;  %v3841_v58 = vld [vmem:[%s5876_s5 + $0x1a0] ss:$16 sps:$4 sm:$0xff]  }
  0x3b   : > { %1228 = vmatprep.subr.bf16.mxu0 %v3810_v61  ;;  %1178 = vmatpush1.bf16.msra.mxu1 %v3817_v3  ;;  %v3844_v61 = vld [vmem:[%s5876_s5 + $0x188] ss:$16 sps:$4 sm:$0xff]   ;;  %v3854_v3 = vld [vmem:[%s5876_s5 + $0x144] ss:$16 sps:$4 sm:$0xff]  }
  0x3c   : > { %1179 = vmatprep.subr.bf16.mxu1 %v3818_v4  ;;  %v3856_v4 = vld [vmem:[%s5876_s5 + $0x148] ss:$16 sps:$4 sm:$0xff]  }
  0x3e   : > { %1229 = vmatpush1.bf16.msra.mxu0 %v3808_v62  ;;  %v3847_v62 = vld [vmem:[%s5876_s5 + $0x180] ss:$16 sps:$4 sm:$0xff]  }
  0x3f   : > { %1230 = vmatprep.subr.bf16.mxu0 %v3816_v1  ;;  %1180 = vmatpush1.bf16.msra.mxu1 %v3823_v7  ;;  %v3850_v1 = vld [vmem:[%s5876_s5 + $0x168] ss:$16 sps:$4 sm:$0xff]   ;;  %v3860_v7 = vld [vmem:[%s5876_s5 + $0x124] ss:$16 sps:$4 sm:$0xff]  }
  0x40   : > { %1181 = vmatprep.subr.bf16.mxu1 %v3824_v8  ;;  %v3864_v8 = vld [vmem:[%s5876_s5 + $0x12c] ss:$16 sps:$4 sm:$0xff]  }
  0x42   : > { %1231 = vmatpush1.bf16.msra.mxu0 %v3814_v2  ;;  %v3853_v2 = vld [vmem:[%s5876_s5 + $0x160] ss:$16 sps:$4 sm:$0xff]  }
  0x43   : > { %1232 = vmatprep.subr.bf16.mxu0 %v3822_v5  ;;  %1182 = vmatpush2.bf16.msra.mxu1 %v3829_v49  ;;  %v3858_v5 = vld [vmem:[%s5876_s5 + $0x14c] ss:$16 sps:$4 sm:$0xff]  }
  0x44   : > { %1183 = vmatprep.subr.bf16.mxu1 %v3830_v51 }
  0x46   : > { %1233 = vmatpush1.bf16.msra.mxu0 %v3820_v6  ;;  %v3859_v6 = vld [vmem:[%s5876_s5 + $0x140] ss:$16 sps:$4 sm:$0xff]  }
  0x47   : > { %1234 = vmatprep.subr.bf16.mxu0 %v3828_v9  ;;  %1184 = vmatpush2.bf16.msra.mxu1 %v3835_v54  ;;  %v3862_v9 = vld [vmem:[%s5876_s5 + $0x128] ss:$16 sps:$4 sm:$0xff]  }
  0x48   : > { %1185 = vmatprep.subr.bf16.mxu1 %v3836_v55 }
  0x4a   : > { %1235 = vmatpush2.bf16.msra.mxu0 %v3826_v10  ;;  %v3865_v10 = vld [vmem:[%s5876_s5 + $0x120] ss:$16 sps:$4 sm:$0xff]  }
  0x4b   : > { %1236 = vmatprep.subr.bf16.mxu0 %v3834_v52  ;;  %1186 = vmatpush2.bf16.msra.mxu1 %v3841_v58 }
  0x4c   : > { %1187 = vmatprep.subr.bf16.mxu1 %v3842_v59 }
  0x4e   : > { %1237 = vmatpush2.bf16.msra.mxu0 %v3832_v53  ;;  %v735_v53 = vld [vmem:[%s5875_s4] sm:$0x3] }
  0x4f   : > { %1238 = vmatprep.subr.bf16.mxu0 %v3840_v56  ;;  %1188 = vmatpush2.bf16.msra.mxu1 %v3847_v62  ;;  %v744_v58 = vrot.slane %v735_v53, %v4498_v16 }
  0x50   : > { %1189 = vmatprep.subr.bf16.mxu1 %v3848_v63 }
  0x52   : > { %1239 = vmatpush2.bf16.msra.mxu0 %v3838_v57  ;;  %v740_v57 = vrot.slane %v735_v53, %v4495_v15  ;;  %v3902_v53 = vld [vmem:[%s5878_s7 + $0x20] ss:$8 sps:$4 sm:$0xff]  }
  0x53   : > { %1240 = vmatprep.subr.bf16.mxu0 %v3846_v60  ;;  %1190 = vmatpush2.bf16.msra.mxu1 %v3853_v2 }
  0x54   : > { %1191 = vmatprep.subr.bf16.mxu1 %v3854_v3 }
  0x56   : > { %1241 = vmatpush2.bf16.msra.mxu0 %v3844_v61 }
  0x57   : > { %1242 = vmatprep.subr.bf16.mxu0 %v3852_v0  ;;  %1192 = vmatpush2.bf16.msra.mxu1 %v3859_v6 }
  0x58   : > { %1193 = vmatprep.subr.bf16.mxu1 %v3860_v7  ;;  %v3872_v7 = vld [vmem:[%s5878_s7 + $0x70] ss:$8 sps:$4 sm:$0xff]  }
  0x5a   : > { %1243 = vmatpush2.bf16.msra.mxu0 %v3850_v1 }
  0x5b   : > { %1244 = vmatprep.subr.bf16.mxu0 %v3858_v5  ;;  %1194 = vmatpush2.bf16.msra.mxu1 %v3865_v10 }
  0x5e   : > { %1245 = vmatpush2.bf16.msra.mxu0 %v3856_v4 }
  0x5f   : > { %1246 = vmatprep.subr.bf16.mxu0 %v3864_v8 }
  0x62   : > { %1247 = vmatpush2.bf16.msra.mxu0 %v3862_v9  ;;  %v3880_v9 = vld [vmem:[%s5878_s7 + $0x64] ss:$8 sps:$4 sm:$0xff]  }
  0xe9   : > { %v631_v20 = vpop.f32.mrf.mxu0 }
  0xea   : > { %v4505_v22 = vadd.f32 %v631_v20, %v553_v18 }
  0xeb   : > { %v633_v21 = vpop.f32.mrf.mxu0 }
  0xec   : > { %v4507_v23 = vadd.f32 %v633_v21, %v557_v19 }
  0xed   : > { %v635_v24 = vpop.f32.mrf.mxu0 }
  0xee   : > { %v650_v25 = vadd.f32 %v4507_v23, %v4505_v22  ;;  %v4511_v27 = vadd.f32 %v635_v24, %v553_v18 }
  0xef   : > { %v637_v26 = vpop.f32.mrf.mxu0 }
  0xf0   : > { %v4513_v28 = vadd.f32 %v637_v26, %v557_v19  ;;  %651 = vadd.xlane.f32.xlu0 %v650_v25 }
  0xf1   : > { %v641_v29 = vpop.f32.mrf.mxu0 }
  0xf2   : > { %v653_v30 = vadd.f32 %v4513_v28, %v4511_v27  ;;  %v4517_v32 = vadd.f32 %v641_v29, %v553_v18 }
  0xf3   : > { %v643_v31 = vpop.f32.mrf.mxu0 }
  0xf4   : > { %v4519_v33 = vadd.f32 %v643_v31, %v557_v19  ;;  %654 = vadd.xlane.f32.xlu0 %v653_v30 }
  0xf5   : > { %v645_v34 = vpop.f32.mrf.mxu0 }
  0xf6   : > { %v656_v35 = vadd.f32 %v4519_v33, %v4517_v32  ;;  %v4523_v37 = vadd.f32 %v645_v34, %v553_v18 }
  0xf7   : > { %v647_v36 = vpop.f32.mrf.mxu0 }
  0xf8   : > { %v4525_v38 = vadd.f32 %v647_v36, %v557_v19  ;;  %657 = vadd.xlane.f32.xlu1 %v656_v35 }
  0xfa   : > { %v659_v39 = vadd.f32 %v4525_v38, %v4523_v37 }
  0xfc   : > { %660 = vadd.xlane.f32.xlu1 %v659_v39 }
 0x179   : > { %v652_v11 = vpop.xlane.xlu0 %651 }
 0x17a   : > { %v663_v12 = vmul.f32 0.00390625, %v652_v11  ;;  %v3866_v11 = vld [vmem:[%s5876_s5 + $0x104] ss:$16 sps:$4 sm:$0xff]  }
 0x17b   : > { %1195 = vmatprep.subr.bf16.mxu1 %v3866_v11 }
 0x17c   : > { %v4635_v13 = vsub.f32 %v4505_v22, %v663_v12  ;;  %v4638_v17 = vsub.f32 %v4507_v23, %v663_v12  ;;  %v3870_v12 = vld [vmem:[%s5876_s5 + $0x10c] ss:$16 sps:$4 sm:$0xff]  }
 0x17d   : > { %v655_v18 = vpop.xlane.xlu0 %654  ;;  %1248 = vmatprep.subr.bf16.mxu0 %v3870_v12 }
 0x17e   : > { %v664_v19 = vmul.f32 0.00390625, %v655_v18  ;;  %v675_v20 = vmul.f32 %v4635_v13, %v4635_v13  ;;  %v676_v21 = vmul.f32 %v4638_v17, %v4638_v17  ;;  %v3868_v18 = vld [vmem:[%s5876_s5 + $0x108] ss:$16 sps:$4 sm:$0xff]  }
 0x17f   : > { %1249 = vmatpush2.bf16.msra.mxu0 %v3868_v18 }
 0x180   : > { %v4645_v24 = vsub.f32 %v4511_v27, %v664_v19  ;;  %v4648_v25 = vsub.f32 %v4513_v28, %v664_v19  ;;  %v683_v26 = vadd.f32 %v676_v21, %v675_v20  ;;  %v3871_v19 = vld [vmem:[%s5876_s5 + $0x100] ss:$16 sps:$4 sm:$0xff]   ;;  %v3874_v20 = vld [vmem:[%s5878_s7 + $0x74] ss:$8 sps:$4 sm:$0xff]  }
 0x181   : > { %v658_v29 = vpop.xlane.xlu1 %657  ;;  %1196 = vmatpush2.bf16.msra.mxu1 %v3871_v19  ;;  %v3877_v21 = vld [vmem:[%s5878_s7 + $0x174] ss:$8 sps:$4 sm:$0xff]   ;;  %v3878_v19 = vld [vmem:[%s5878_s7 + $0x60] ss:$8 sps:$4 sm:$0xff]  }
 0x182   : > { %v665_v30 = vmul.f32 0.00390625, %v658_v29  ;;  %684 = vadd.xlane.f32.xlu0 %v683_v26  ;;  %v677_v31 = vmul.f32 %v4645_v24, %v4645_v24  ;;  %v678_v34 = vmul.f32 %v4648_v25, %v4648_v25  ;;  %1807 = vmatprep.subr.bf16.mxu1 %v3874_v20  ;;  %v3881_v20 = vld [vmem:[%s5878_s7 + $0x160] ss:$8 sps:$4 sm:$0xff]  }
 0x183   : > { %1860 = vmatprep.subr.bf16.mxu0 %v3877_v21 }
 0x184   : > { %v4655_v35 = vsub.f32 %v4517_v32, %v665_v30  ;;  %v4658_v36 = vsub.f32 %v4519_v33, %v665_v30  ;;  %v686_v39 = vadd.f32 %v678_v34, %v677_v31 }
 0x185   : > { %v661_v40 = vpop.xlane.xlu1 %660 }
 0x186   : > { %v666_v41 = vmul.f32 0.00390625, %v661_v40  ;;  %687 = vadd.xlane.f32.xlu1 %v686_v39  ;;  %v679_v42 = vmul.f32 %v4655_v35, %v4655_v35  ;;  %v680_v43 = vmul.f32 %v4658_v36, %v4658_v36 }
 0x188   : > { %v4665_v44 = vsub.f32 %v4523_v37, %v666_v41  ;;  %v4668_v45 = vsub.f32 %v4525_v38, %v666_v41  ;;  %v689_v46 = vadd.f32 %v680_v43, %v679_v42 }
 0x18a   : > { %690 = vadd.xlane.f32.xlu0 %v689_v46  ;;  %v681_v47 = vmul.f32 %v4665_v44, %v4665_v44  ;;  %v682_v48 = vmul.f32 %v4668_v45, %v4668_v45 }
 0x18c   : > { %v692_v50 = vadd.f32 %v682_v48, %v681_v47  ;;  %v715_v48 = vld [vmem:[%s5874_s3] sm:$0x3] }
 0x18d   : > { %v724_v51 = vrot.slane %v715_v48, %v4498_v16 }
 0x18e   : > { %693 = vadd.xlane.f32.xlu1 %v692_v50  ;;  %v720_v50 = vrot.slane %v715_v48, %v4495_v15  ;;  %v3901_v48 = vld [vmem:[%s5878_s7 + $0x134] ss:$8 sps:$4 sm:$0xff]  }
 0x20b   : > { %v685_v26 = vpop.xlane.xlu0 %684 }
 0x20c   : > { %v695_v29 = vmul.f32 0.00390625, %v685_v26 }
 0x20e   : > { %v699_v30 = vadd.f32 1e-06, %v695_v29 }
 0x20f   : > { %v688_v31 = vpop.xlane.xlu1 %687 }
 0x210   : > { %4160 = vrsqrt.f32 %v699_v30  ;;  %v696_v34 = vmul.f32 0.00390625, %v688_v31 }
 0x212   : > { %v700_v39 = vadd.f32 1e-06, %v696_v34 }
 0x213   : > { %v691_v40 = vpop.xlane.xlu0 %690 }
 0x214   : > { %4162 = vrsqrt.f32 %v700_v39  ;;  %v697_v41 = vmul.f32 0.00390625, %v691_v40  ;;  %v3884_v39 = vld [vmem:[%s5878_s7 + $0x50] ss:$8 sps:$4 sm:$0xff]  }
 0x215   : > { %v3887_v40 = vld [vmem:[%s5878_s7 + $0x150] ss:$8 sps:$4 sm:$0xff]  }
 0x216   : > { %v701_v42 = vadd.f32 1e-06, %v697_v41  ;;  %v3892_v41 = vld [vmem:[%s5878_s7 + $0x44] ss:$8 sps:$4 sm:$0xff]  }
 0x217   : > { %v694_v43 = vpop.xlane.xlu1 %693 }
 0x218   : > { %4164 = vrsqrt.f32 %v701_v42  ;;  %v698_v46 = vmul.f32 0.00390625, %v694_v43  ;;  %v3895_v42 = vld [vmem:[%s5878_s7 + $0x144] ss:$8 sps:$4 sm:$0xff]   ;;  %v3890_v43 = vld [vmem:[%s5878_s7 + $0x40] ss:$8 sps:$4 sm:$0xff]  }
 0x21a   : > { %v702_v47 = vadd.f32 1e-06, %v698_v46  ;;  %v3893_v46 = vld [vmem:[%s5878_s7 + $0x140] ss:$8 sps:$4 sm:$0xff]  }
 0x21c   : > { %4166 = vrsqrt.f32 %v702_v47  ;;  %v3898_v47 = vld [vmem:[%s5878_s7 + $0x34] ss:$8 sps:$4 sm:$0xff]  }
 0x21d   : > { %v4161_v49 = vpop.eup %4160 }
 0x21e   : > { %v708_v52 = vmul.f32 %v4161_v49, %v4638_v17  ;;  %v707_v54 = vmul.f32 %v4161_v49, %v4635_v13  ;;  %v3896_v49 = vld [vmem:[%s5878_s7 + $0x30] ss:$8 sps:$4 sm:$0xff]  }
 0x220   : > { %v728_v56 = vmul.f32 %v724_v51, %v708_v52  ;;  %v727_v59 = vmul.f32 %v720_v50, %v707_v54  ;;  %v3907_v52 = vld [vmem:[%s5878_s7 + $0x124] ss:$8 sps:$4 sm:$0xff]   ;;  %v3905_v54 = vld [vmem:[%s5878_s7 + $0x120] ss:$8 sps:$4 sm:$0xff]  }
 0x221   : > { %v4163_v55 = vpop.eup %4162 }
 0x222   : > { %v710_v60 = vmul.f32 %v4163_v55, %v4648_v25  ;;  %v709_v61 = vmul.f32 %v4163_v55, %v4645_v24  ;;  %v748_v0 = vadd.f32 %v744_v58, %v728_v56  ;;  %v747_v1 = vadd.f32 %v740_v57, %v727_v59  ;;  %v3875_v24 = vld [vmem:[%s5878_s7 + $0x170] ss:$8 sps:$4 sm:$0xff]   ;;  %v3910_v55 = vld [vmem:[%s5878_s7 + $0x14] ss:$8 sps:$4 sm:$0xff]   ;;  %v3916_v59 = vld [vmem:[%s5878_s7 + $0x4] ss:$8 sps:$4 sm:$0xff]  }
 0x223   : > { %v3913_v56 = vld [vmem:[%s5878_s7 + $0x114] ss:$8 sps:$4 sm:$0xff]  }
 0x224   : > { %v730_v62 = vmul.f32 %v724_v51, %v710_v60  ;;  %v729_v63 = vmul.f32 %v720_v50, %v709_v61  ;;  %v3919_v60 = vld [vmem:[%s5878_s7 + $0x104] ss:$8 sps:$4 sm:$0xff]   ;;  %v3914_v61 = vld [vmem:[%s5878_s7] ss:$8 sps:$4 sm:$0xff]  }
 0x225   : > { %v4165_v17 = vpop.eup %4164 }
 0x226   : > { %v750_v2 = vadd.f32 %v744_v58, %v730_v62  ;;  %v749_v3 = vadd.f32 %v740_v57, %v729_v63  ;;  %v712_v13 = vmul.f32 %v4165_v17, %v4658_v36  ;;  %v711_v4 = vmul.f32 %v4165_v17, %v4655_v35  ;;  %v3883_v35 = vld [vmem:[%s5878_s7 + $0x164] ss:$8 sps:$4 sm:$0xff]   ;;  %v3917_v62 = vld [vmem:[%s5878_s7 + $0x100] ss:$8 sps:$4 sm:$0xff]   ;;  %v3922_v63 = vld [vmem:[%s5878_s7 + $0xf4] ss:$8 sps:$4 sm:$0xff]  }
 0x227   : > { %v3925_v17 = vld [vmem:[%s5878_s7 + $0x1f4] ss:$8 sps:$4 sm:$0xff]  }
 0x228   : > { %v756_v5 = vpack.c.bf16 %v750_v2, %v748_v0  ;;  %v755_v6 = vpack.c.bf16 %v749_v3, %v747_v1  ;;  %v732_v8 = vmul.f32 %v724_v51, %v712_v13  ;;  %v731_v11 = vmul.f32 %v720_v50, %v711_v4  ;;  %v3920_v0 = vld [vmem:[%s5878_s7 + $0xf0] ss:$8 sps:$4 sm:$0xff]   ;;  %v3928_v2 = vld [vmem:[%s5878_s7 + $0xe4] ss:$8 sps:$4 sm:$0xff]   ;;  %v3926_v13 = vld [vmem:[%s5878_s7 + $0xe0] ss:$8 sps:$4 sm:$0xff]  }
 0x229   : > { %v4167_v25 = vpop.eup %4166  ;;  %v3923_v1 = vld [vmem:[%s5878_s7 + $0x1f0] ss:$8 sps:$4 sm:$0xff]   ;;  %v3931_v3 = vld [vmem:[%s5878_s7 + $0x1e4] ss:$8 sps:$4 sm:$0xff]   ;;  %v3929_v4 = vld [vmem:[%s5878_s7 + $0x1e0] ss:$8 sps:$4 sm:$0xff]  }
 0x22a   : > { %1197 = vmatprep.mubr.bf16.mxu1 %v756_v5  ;;  %1250 = vmatprep.mubr.bf16.mxu0 %v756_v5  ;;  %v714_v36 = vmul.f32 %v4167_v25, %v4668_v45  ;;  %v713_v10 = vmul.f32 %v4167_v25, %v4665_v44  ;;  %v3886_v44 = vld [vmem:[%s5878_s7 + $0x54] ss:$8 sps:$4 sm:$0xff]   ;;  %v752_v21 = vadd.f32 %v744_v58, %v732_v8  ;;  %v3940_v25 = vld [vmem:[%s5878_s7 + $0xc4] ss:$8 sps:$4 sm:$0xff]  }
 0x22b   : > { %1198 = vmatmul.mubr.bf16.vlgmr.msra.gmra.mxu1 %v755_v6  ;;  %1251 = vmatmul.mubr.bf16.vlgmr.msra.gmra.mxu0 %v755_v6  ;;  %v3889_v45 = vld [vmem:[%s5878_s7 + $0x154] ss:$8 sps:$4 sm:$0xff]   ;;  %v751_v29 = vadd.f32 %v740_v57, %v731_v11  ;;  %v3943_v8 = vld [vmem:[%s5878_s7 + $0x1c4] ss:$8 sps:$4 sm:$0xff]   ;;  %v3944_v11 = vld [vmem:[%s5878_s7 + $0xb0] ss:$8 sps:$4 sm:$0xff]  }
 0x22c   : > { %v734_v12 = vmul.f32 %v724_v51, %v714_v36  ;;  %v733_v18 = vmul.f32 %v720_v50, %v713_v10  ;;  %1808 = vmatpush1.bf16.msra.mxu1 %v3872_v7  ;;  %1861 = vmatpush1.bf16.msra.mxu0 %v3875_v24  ;;  %v3899_v50 = vld [vmem:[%s5878_s7 + $0x130] ss:$8 sps:$4 sm:$0xff]   ;;  %v3904_v51 = vld [vmem:[%s5878_s7 + $0x24] ss:$8 sps:$4 sm:$0xff]   ;;  %v3934_v5 = vld [vmem:[%s5878_s7 + $0xd4] ss:$8 sps:$4 sm:$0xff]  }
 0x22d   : > { %1809 = vmatprep.subr.bf16.mxu1 %v3880_v9  ;;  %1862 = vmatprep.subr.bf16.mxu0 %v3883_v35  ;;  %v3937_v6 = vld [vmem:[%s5878_s7 + $0x1d4] ss:$8 sps:$4 sm:$0xff]   ;;  %v3932_v7 = vld [vmem:[%s5878_s7 + $0xd0] ss:$8 sps:$4 sm:$0xff]   ;;  %v3938_v9 = vld [vmem:[%s5878_s7 + $0xc0] ss:$8 sps:$4 sm:$0xff]  }
 0x22e   : > { %v754_v26 = vadd.f32 %v744_v58, %v734_v12  ;;  %v753_v30 = vadd.f32 %v740_v57, %v733_v18  ;;  %v3908_v57 = vld [vmem:[%s5878_s7 + $0x10] ss:$8 sps:$4 sm:$0xff]   ;;  %v3941_v35 = vld [vmem:[%s5878_s7 + $0x1c0] ss:$8 sps:$4 sm:$0xff]   ;;  %v3946_v36 = vld [vmem:[%s5878_s7 + $0xb4] ss:$8 sps:$4 sm:$0xff]  }
 0x22f   : > { %v3911_v58 = vld [vmem:[%s5878_s7 + $0x110] ss:$8 sps:$4 sm:$0xff]   ;;  %v3949_v10 = vld [vmem:[%s5878_s7 + $0x1b4] ss:$8 sps:$4 sm:$0xff]   ;;  %v3952_v18 = vld [vmem:[%s5878_s7 + $0xa4] ss:$8 sps:$4 sm:$0xff]  }
 0x230   : > { %v758_v31 = vpack.c.bf16 %v754_v26, %v752_v21  ;;  %v757_v34 = vpack.c.bf16 %v753_v30, %v751_v29  ;;  %1810 = vmatpush1.bf16.msra.mxu1 %v3878_v19  ;;  %1863 = vmatpush1.bf16.msra.mxu0 %v3881_v20  ;;  %v3935_v24 = vld [vmem:[%s5878_s7 + $0x1d0] ss:$8 sps:$4 sm:$0xff]   ;;  %v3955_v19 = vld [vmem:[%s5878_s7 + $0x1a4] ss:$8 sps:$4 sm:$0xff]   ;;  %v3950_v20 = vld [vmem:[%s5878_s7 + $0xa0] ss:$8 sps:$4 sm:$0xff]  }
 0x231   : > { %1811 = vmatprep.subr.bf16.mxu1 %v3886_v44  ;;  %1864 = vmatprep.subr.bf16.mxu0 %v3889_v45  ;;  %v3947_v12 = vld [vmem:[%s5878_s7 + $0x1b0] ss:$8 sps:$4 sm:$0xff]   ;;  %v3953_v44 = vld [vmem:[%s5878_s7 + $0x1a0] ss:$8 sps:$4 sm:$0xff]   ;;  %v3958_v45 = vld [vmem:[%s5878_s7 + $0x94] ss:$8 sps:$4 sm:$0xff]  }
 0x232   : > { %1207 = vmatprep.mubr.bf16.mxu1 %v758_v31  ;;  %1260 = vmatprep.mubr.bf16.mxu0 %v758_v31  ;;  %v3961_v21 = vld [vmem:[%s5878_s7 + $0x194] ss:$8 sps:$4 sm:$0xff]   ;;  %v3956_v26 = vld [vmem:[%s5878_s7 + $0x90] ss:$8 sps:$4 sm:$0xff]   ;;  %v3964_v30 = vld [vmem:[%s5878_s7 + $0x84] ss:$8 sps:$4 sm:$0xff]  }
 0x233   : > { %1208 = vmatmul.mubr.bf16.gmra.mxu1 %v757_v34  ;;  %1261 = vmatmul.mubr.bf16.gmra.mxu0 %v757_v34  ;;  %v3959_v29 = vld [vmem:[%s5878_s7 + $0x190] ss:$8 sps:$4 sm:$0xff]   ;;  %v3967_v31 = vld [vmem:[%s5878_s7 + $0x184] ss:$8 sps:$4 sm:$0xff]   ;;  %v3962_v34 = vld [vmem:[%s5878_s7 + $0x80] ss:$8 sps:$4 sm:$0xff]  }
 0x234   : > { %1812 = vmatpush1.bf16.msra.mxu1 %v3884_v39  ;;  %1865 = vmatpush1.bf16.msra.mxu0 %v3887_v40  ;;  %v3965_v39 = vld [vmem:[%s5878_s7 + $0x180] ss:$8 sps:$4 sm:$0xff]   ;;  %v835_v40 = vsub.s32 2, %v4492_v14 }
 0x235   : > { %1813 = vmatprep.subr.bf16.mxu1 %v3892_v41  ;;  %1866 = vmatprep.subr.bf16.mxu0 %v3895_v42  ;;  %v823_v41 = vld [vmem:[%s5877_s6] sm:$0xf]  ;;  %v839_v42 = vsub.s32 3, %v4492_v14 }
 0x238   : > { %1814 = vmatpush1.bf16.msra.mxu1 %v3890_v43  ;;  %1867 = vmatpush1.bf16.msra.mxu0 %v3893_v46  ;;  %v4977_v43 = vrot.slane %v823_v41, %v4495_v15  ;;  %v4981_v46 = vrot.slane %v823_v41, %v835_v40 }
 0x239   : > { %1815 = vmatprep.subr.bf16.mxu1 %v3898_v47  ;;  %1868 = vmatprep.subr.bf16.mxu0 %v3901_v48 }
 0x23c   : > { %1816 = vmatpush1.bf16.msra.mxu1 %v3896_v49  ;;  %1869 = vmatpush1.bf16.msra.mxu0 %v3899_v50  ;;  %v4984_v49 = vrot.slane %v823_v41, %v4498_v16  ;;  %v4988_v50 = vrot.slane %v823_v41, %v839_v42 }
 0x23d   : > { %1817 = vmatprep.subr.bf16.mxu1 %v3904_v51  ;;  %1870 = vmatprep.subr.bf16.mxu0 %v3907_v52 }
 0x240   : > { %1818 = vmatpush1.bf16.msra.mxu1 %v3902_v53  ;;  %1871 = vmatpush1.bf16.msra.mxu0 %v3905_v54 }
 0x241   : > { %1819 = vmatprep.subr.bf16.mxu1 %v3910_v55  ;;  %1872 = vmatprep.subr.bf16.mxu0 %v3913_v56 }
 0x244   : > { %1820 = vmatpush1.bf16.msra.mxu1 %v3908_v57  ;;  %1873 = vmatpush1.bf16.msra.mxu0 %v3911_v58 }
 0x245   : > { %1821 = vmatprep.subr.bf16.mxu1 %v3916_v59  ;;  %1874 = vmatprep.subr.bf16.mxu0 %v3919_v60 }
 0x248   : > { %1822 = vmatpush1.bf16.msra.mxu1 %v3914_v61  ;;  %1875 = vmatpush1.bf16.msra.mxu0 %v3917_v62 }
 0x249   : > { %1823 = vmatprep.subr.bf16.mxu1 %v3922_v63  ;;  %1876 = vmatprep.subr.bf16.mxu0 %v3925_v17 }
 0x24c   : > { %1824 = vmatpush2.bf16.msra.mxu1 %v3920_v0  ;;  %1877 = vmatpush2.bf16.msra.mxu0 %v3923_v1 }
 0x24d   : > { %1825 = vmatprep.subr.bf16.mxu1 %v3928_v2  ;;  %1878 = vmatprep.subr.bf16.mxu0 %v3931_v3 }
 0x250   : > { %1826 = vmatpush2.bf16.msra.mxu1 %v3926_v13  ;;  %1879 = vmatpush2.bf16.msra.mxu0 %v3929_v4 }
 0x251   : > { %1827 = vmatprep.subr.bf16.mxu1 %v3934_v5  ;;  %1880 = vmatprep.subr.bf16.mxu0 %v3937_v6 }
 0x254   : > { %1828 = vmatpush2.bf16.msra.mxu1 %v3932_v7  ;;  %1881 = vmatpush2.bf16.msra.mxu0 %v3935_v24 }
 0x255   : > { %1829 = vmatprep.subr.bf16.mxu1 %v3940_v25  ;;  %1882 = vmatprep.subr.bf16.mxu0 %v3943_v8 }
 0x258   : > { %1830 = vmatpush2.bf16.msra.mxu1 %v3938_v9  ;;  %1883 = vmatpush2.bf16.msra.mxu0 %v3941_v35 }
 0x259   : > { %1831 = vmatprep.subr.bf16.mxu1 %v3946_v36  ;;  %1884 = vmatprep.subr.bf16.mxu0 %v3949_v10 }
 0x25c   : > { %1832 = vmatpush2.bf16.msra.mxu1 %v3944_v11  ;;  %1885 = vmatpush2.bf16.msra.mxu0 %v3947_v12 }
 0x25d   : > { %1833 = vmatprep.subr.bf16.mxu1 %v3952_v18  ;;  %1886 = vmatprep.subr.bf16.mxu0 %v3955_v19 }
 0x260   : > { %1834 = vmatpush2.bf16.msra.mxu1 %v3950_v20  ;;  %1887 = vmatpush2.bf16.msra.mxu0 %v3953_v44 }
 0x261   : > { %1835 = vmatprep.subr.bf16.mxu1 %v3958_v45  ;;  %1888 = vmatprep.subr.bf16.mxu0 %v3961_v21 }
 0x264   : > { %1836 = vmatpush2.bf16.msra.mxu1 %v3956_v26  ;;  %1889 = vmatpush2.bf16.msra.mxu0 %v3959_v29 }
 0x265   : > { %1837 = vmatprep.subr.bf16.mxu1 %v3964_v30  ;;  %1890 = vmatprep.subr.bf16.mxu0 %v3967_v31 }
 0x268   : > { %1838 = vmatpush2.bf16.msra.mxu1 %v3962_v34  ;;  %1891 = vmatpush2.bf16.msra.mxu0 %v3965_v39 }
 0x2eb   : > { %v1199_v47 = vpop.f32.mrf.mxu1  ;;  %v1252_v48 = vpop.f32.mrf.mxu0 }
 0x2ec   : > { %v4991_v51 = vadd.f32 %v1199_v47, %v4977_v43  ;;  %v4994_v52 = vadd.f32 %v1252_v48, %v4981_v46 }
 0x2ed   : > { %v1201_v53 = vpop.f32.mrf.mxu1  ;;  %v1254_v54 = vpop.f32.mrf.mxu0 }
 0x2ee   : > { %v1271_v55 = vmul.f32 %v4991_v51, %v4991_v51  ;;  %v1273_v56 = vmul.f32 %v4994_v52, %v4994_v52  ;;  %v5001_v57 = vadd.f32 %v1201_v53, %v4984_v49  ;;  %v5004_v58 = vadd.f32 %v1254_v54, %v4988_v50 }
 0x2ef   : > { %v1203_v59 = vpop.f32.mrf.mxu1  ;;  %v1256_v60 = vpop.f32.mrf.mxu0 }
 0x2f0   : > { %v1287_v61 = vmul.f32 %v1271_v55, %v4991_v51  ;;  %v1289_v62 = vmul.f32 %v1273_v56, %v4994_v52  ;;  %v5009_v63 = vadd.f32 %v1203_v59, %v4977_v43  ;;  %v5012_v17 = vadd.f32 %v1256_v60, %v4981_v46 }
 0x2f1   : > { %v1272_v0 = vmul.f32 %v5001_v57, %v5001_v57  ;;  %v1274_v1 = vmul.f32 %v5004_v58, %v5004_v58  ;;  %v1205_v2 = vpop.f32.mrf.mxu1  ;;  %v1258_v3 = vpop.f32.mrf.mxu0 }
 0x2f2   : > { %v1303_v13 = vmul.f32 0.044715, %v1287_v61  ;;  %v1305_v4 = vmul.f32 0.044715, %v1289_v62  ;;  %v1275_v5 = vmul.f32 %v5009_v63, %v5009_v63  ;;  %v1277_v24 = vmul.f32 %v5012_v17, %v5012_v17 }
 0x2f3   : > { %v1288_v6 = vmul.f32 %v1272_v0, %v5001_v57  ;;  %v1290_v7 = vmul.f32 %v1274_v1, %v5004_v58  ;;  %v1209_v25 = vpop.f32.mrf.mxu1  ;;  %v5028_v36 = vadd.f32 %v1205_v2, %v4984_v49  ;;  %v5032_v18 = vadd.f32 %v1258_v3, %v4988_v50  ;;  %v1262_v19 = vpop.f32.mrf.mxu0 }
 0x2f4   : > { %v1319_v8 = vadd.f32 %v1303_v13, %v4991_v51  ;;  %v1321_v9 = vadd.f32 %v1305_v4, %v4994_v52  ;;  %v1291_v35 = vmul.f32 %v1275_v5, %v5009_v63  ;;  %v1293_v12 = vmul.f32 %v1277_v24, %v5012_v17 }
 0x2f5   : > { %v1304_v10 = vmul.f32 0.044715, %v1288_v6  ;;  %v1306_v11 = vmul.f32 0.044715, %v1290_v7  ;;  %v1276_v21 = vmul.f32 %v5028_v36, %v5028_v36  ;;  %v1278_v31 = vmul.f32 %v5032_v18, %v5032_v18  ;;  %v1211_v34 = vpop.f32.mrf.mxu1  ;;  %v1264_v55 = vpop.f32.mrf.mxu0 }
 0x2f6   : > { %v1335_v20 = vmul.f32 0.7978846, %v1319_v8  ;;  %v1337_v44 = vmul.f32 0.7978846, %v1321_v9  ;;  %v1307_v45 = vmul.f32 0.044715, %v1291_v35  ;;  %v5043_v47 = vadd.f32 %v1209_v25, %v4977_v43 }
 0x2f7   : > { %v1320_v26 = vadd.f32 %v1304_v10, %v5001_v57  ;;  %v1322_v29 = vadd.f32 %v1306_v11, %v5004_v58  ;;  %v1309_v30 = vmul.f32 0.044715, %v1293_v12  ;;  %v1292_v41 = vmul.f32 %v1276_v21, %v5028_v36  ;;  %v1213_v2 = vpop.f32.mrf.mxu1  ;;  %v1266_v24 = vpop.f32.mrf.mxu0 }
 0x2f8   : > { %4168 = vtanh.f32 %v1335_v20  ;;  %v1323_v39 = vadd.f32 %v1307_v45, %v5009_v63  ;;  %v1294_v60 = vmul.f32 %v1278_v31, %v5032_v18  ;;  %v1279_v61 = vmul.f32 %v5043_v47, %v5043_v47 }
 0x2f9   : > { %4170 = vtanh.f32 %v1337_v44  ;;  %v1336_v48 = vmul.f32 0.7978846, %v1320_v26  ;;  %v1338_v53 = vmul.f32 0.7978846, %v1322_v29  ;;  %v1325_v54 = vadd.f32 %v1309_v30, %v5012_v17  ;;  %v1268_v31 = vpop.f32.mrf.mxu0 }
 0x2fa   : > { %v1339_v56 = vmul.f32 0.7978846, %v1323_v39  ;;  %v1308_v59 = vmul.f32 0.044715, %v1292_v41  ;;  %v5050_v0 = vadd.f32 %v1262_v19, %v4981_v46  ;;  %v5053_v1 = vadd.f32 %v1211_v34, %v4984_v49  ;;  %v1215_v19 = vpop.f32.mrf.mxu1 }
 0x2fb   : > { %4172 = vtanh.f32 %v1336_v48  ;;  %v1341_v62 = vmul.f32 0.7978846, %v1325_v54  ;;  %v1310_v13 = vmul.f32 0.044715, %v1294_v60  ;;  %v1295_v4 = vmul.f32 %v1279_v61, %v5043_v47 }
 0x2fc   : > { %4174 = vtanh.f32 %v1338_v53  ;;  %v1324_v3 = vadd.f32 %v1308_v59, %v5028_v36  ;;  %v1281_v5 = vmul.f32 %v5050_v0, %v5050_v0  ;;  %v1280_v6 = vmul.f32 %v5053_v1, %v5053_v1 }
 0x2fd   : > { %4176 = vtanh.f32 %v1339_v56  ;;  %v5062_v7 = vadd.f32 %v1264_v55, %v4988_v50  ;;  %v1326_v8 = vadd.f32 %v1310_v13, %v5032_v18  ;;  %v1311_v9 = vmul.f32 0.044715, %v1295_v4 }
 0x2fe   : > { %4178 = vtanh.f32 %v1341_v62  ;;  %v1340_v25 = vmul.f32 0.7978846, %v1324_v3  ;;  %v1297_v35 = vmul.f32 %v1281_v5, %v5050_v0  ;;  %v1296_v10 = vmul.f32 %v1280_v6, %v5053_v1 }
 0x2ff   : > { %v1282_v11 = vmul.f32 %v5062_v7, %v5062_v7  ;;  %v5070_v12 = vadd.f32 %v1213_v2, %v4977_v43  ;;  %v1342_v20 = vmul.f32 0.7978846, %v1326_v8  ;;  %v1327_v44 = vadd.f32 %v1311_v9, %v5043_v47 }
 0x300   : > { %4180 = vtanh.f32 %v1340_v25  ;;  %v5074_v45 = vadd.f32 %v1266_v24, %v4981_v46  ;;  %v1313_v21 = vmul.f32 0.044715, %v1297_v35  ;;  %v1312_v26 = vmul.f32 0.044715, %v1296_v10 }
 0x301   : > { %v1298_v29 = vmul.f32 %v1282_v11, %v5062_v7  ;;  %v1283_v30 = vmul.f32 %v5070_v12, %v5070_v12  ;;  %4182 = vtanh.f32 %v1342_v20  ;;  %v5082_v34 = vadd.f32 %v1215_v19, %v4984_v49 }
 0x302   : > { %v1285_v43 = vmul.f32 %v5074_v45, %v5074_v45  ;;  %v1329_v39 = vadd.f32 %v1313_v21, %v5050_v0  ;;  %v1328_v46 = vadd.f32 %v1312_v26, %v5053_v1  ;;  %v1343_v53 = vmul.f32 0.7978846, %v1327_v44 }
 0x303   : > { %v1314_v41 = vmul.f32 0.044715, %v1298_v29  ;;  %v1299_v48 = vmul.f32 %v1283_v30, %v5070_v12  ;;  %v1284_v55 = vmul.f32 %v5082_v34, %v5082_v34  ;;  %v5091_v56 = vadd.f32 %v1268_v31, %v4988_v50 }
 0x304   : > { %v1301_v54 = vmul.f32 %v1285_v43, %v5074_v45  ;;  %v1345_v60 = vmul.f32 0.7978846, %v1329_v39  ;;  %v1344_v2 = vmul.f32 0.7978846, %v1328_v46  ;;  %v1367_v24 = vmul.f32 0.5, %v4991_v51 }
 0x305   : > { %v4169_v59 = vpop.eup %4168  ;;  %v1330_v49 = vadd.f32 %v1314_v41, %v5062_v7  ;;  %v1315_v61 = vmul.f32 0.044715, %v1299_v48  ;;  %v1300_v13 = vmul.f32 %v1284_v55, %v5082_v34  ;;  %v1286_v4 = vmul.f32 %v5091_v56, %v5091_v56 }
 0x306   : > { %v4171_v62 = vpop.eup %4170  ;;  %v1317_v3 = vmul.f32 0.044715, %v1301_v54  ;;  %4184 = vtanh.f32 %v1343_v53  ;;  %v1368_v44 = vmul.f32 0.5, %v5001_v57  ;;  %v1370_v29 = vmul.f32 0.5, %v5004_v58 }
 0x307   : > { %v1331_v5 = vadd.f32 %v1315_v61, %v5070_v12  ;;  %v1316_v25 = vmul.f32 0.044715, %v1300_v13  ;;  %4186 = vtanh.f32 %v1345_v60  ;;  %v1346_v9 = vmul.f32 0.7978846, %v1330_v49 }
 0x308   : > { %v4173_v6 = vpop.eup %4172  ;;  %v1333_v50 = vadd.f32 %v1317_v3, %v5074_v45  ;;  %v1302_v10 = vmul.f32 %v1286_v4, %v5091_v56  ;;  %4188 = vtanh.f32 %v1344_v2  ;;  %v1371_v30 = vmul.f32 0.5, %v5009_v63 }
 0x309   : > { %v4175_v8 = vpop.eup %4174  ;;  %v1347_v35 = vmul.f32 0.7978846, %v1331_v5  ;;  %v1332_v20 = vadd.f32 %v1316_v25, %v5082_v34  ;;  %v1384_v43 = vadd.f32 1.0, %v4173_v6  ;;  %v1383_v46 = vadd.f32 1.0, %v4169_v59 }
 0x30a   : > { %v4177_v11 = vpop.eup %4176  ;;  %v1349_v19 = vmul.f32 0.7978846, %v1333_v50  ;;  %v1318_v51 = vmul.f32 0.044715, %v1302_v10  ;;  %v1372_v57 = vmul.f32 0.5, %v5028_v36  ;;  %v1386_v54 = vadd.f32 1.0, %v4175_v8 }
 0x30b   : > { %v4179_v21 = vpop.eup %4178  ;;  %v1387_v26 = vadd.f32 1.0, %v4177_v11  ;;  %4190 = vtanh.f32 %v1347_v35  ;;  %v1348_v31 = vmul.f32 0.7978846, %v1332_v20  ;;  %v1385_v60 = vadd.f32 1.0, %v4171_v62 }
 0x30c   : > { %4192 = vtanh.f32 %v1349_v19  ;;  %v1389_v41 = vadd.f32 1.0, %v4179_v21  ;;  %v1334_v48 = vadd.f32 %v1318_v51, %v5091_v56  ;;  %v1373_v58 = vmul.f32 0.5, %v5012_v17 }
 0x30d   : > { %v4181_v39 = vpop.eup %4180  ;;  %4194 = vtanh.f32 %v1346_v9  ;;  %v1403_v49 = vmul.f32 %v1387_v26, %v1371_v30  ;;  %v1400_v61 = vmul.f32 %v1384_v43, %v1368_v44  ;;  %v1374_v3 = vmul.f32 0.5, %v5032_v18 }
 0x30e   : > { %4196 = vtanh.f32 %v1348_v31  ;;  %v1388_v53 = vadd.f32 1.0, %v4181_v39  ;;  %v4183_v55 = vpop.eup %4182  ;;  %v1350_v63 = vmul.f32 0.7978846, %v1334_v48  ;;  %v1399_v13 = vmul.f32 %v1383_v46, %v1367_v24 }
 0x30f   : > { %v1390_v59 = vadd.f32 1.0, %v4183_v55  ;;  %v1369_v4 = vmul.f32 0.5, %v4994_v52  ;;  %v1405_v5 = vmul.f32 %v1389_v41, %v1373_v58  ;;  %v1402_v36 = vmul.f32 %v1386_v54, %v1370_v29 }
 0x310   : > { %v1404_v2 = vmul.f32 %v1388_v53, %v1372_v57  ;;  %4198 = vtanh.f32 %v1350_v63  ;;  %v1415_v8 = vpack.c.bf16 %v1403_v49, %v1399_v13  ;;  %v1379_v44 = vmul.f32 0.5, %v5070_v12 }
 0x311   : > { %v1406_v50 = vmul.f32 %v1390_v59, %v1374_v3  ;;  %v1401_v25 = vmul.f32 %v1385_v60, %v1369_v4  ;;  %v1376_v26 = vmul.f32 0.5, %v5053_v1  ;;  %v1380_v51 = vmul.f32 0.5, %v5082_v34 }
 0x312   : > { %v1416_v6 = vpack.c.bf16 %v1404_v2, %v1400_v61  ;;  %v1375_v43 = vmul.f32 0.5, %v5043_v47  ;;  %v1381_v57 = vmul.f32 0.5, %v5074_v45  ;;  %v1378_v54 = vmul.f32 0.5, %v5062_v7 }
 0x313   : > { %v1418_v62 = vpack.c.bf16 %v1406_v50, %v1402_v36  ;;  %v4185_v9 = vpop.eup %4184  ;;  %v1417_v17 = vpack.c.bf16 %v1405_v5, %v1401_v25  ;;  %v1382_v12 = vmul.f32 0.5, %v5091_v56  ;;  %v1377_v34 = vmul.f32 0.5, %v5050_v0  ;;  %v1921_v56 = vld [vmem:[%s5879_s8] sm:$0x3] }
 0x314   : > { %1839 = vmatprep.mubr.bf16.mxu1 %v1416_v6  ;;  %v4187_v35 = vpop.eup %4186  ;;  %v1391_v21 = vadd.f32 1.0, %v4185_v9  ;;  %v1926_v6 = vrot.slane %v1921_v56, %v4495_v15  ;;  %v1930_v50 = vrot.slane %v1921_v56, %v4498_v16  ;;  %v3980_v56 = vld [vmem:[%s5882_s11 + $0xa0] ss:$16 sps:$4 sm:$0xff]  }
 0x315   : > { %1840 = vmatmul.mubr.bf16.vlgmr.msra.gmra.mxu1 %v1415_v8  ;;  %1892 = vmatprep.mubr.bf16.mxu0 %v1418_v62  ;;  %v4189_v10 = vpop.eup %4188  ;;  %v1393_v53 = vadd.f32 1.0, %v4187_v35 }
 0x316   : > { %1893 = vmatmul.mubr.bf16.vlgmr.msra.gmra.mxu0 %v1417_v17  ;;  %v1392_v19 = vadd.f32 1.0, %v4189_v10  ;;  %v1407_v1 = vmul.f32 %v1391_v21, %v1375_v43 }
 0x317   : > { %v1409_v61 = vmul.f32 %v1393_v53, %v1377_v34 }
 0x318   : > { %v4191_v18 = vpop.eup %4190  ;;  %v1408_v41 = vmul.f32 %v1392_v19, %v1376_v26 }
 0x319   : > { %v4193_v24 = vpop.eup %4192  ;;  %v1395_v11 = vadd.f32 1.0, %v4191_v18 }
 0x31a   : > { %v4195_v52 = vpop.eup %4194  ;;  %v1397_v30 = vadd.f32 1.0, %v4193_v24 }
 0x31b   : > { %v4197_v20 = vpop.eup %4196  ;;  %v1394_v31 = vadd.f32 1.0, %v4195_v52  ;;  %v1411_v39 = vmul.f32 %v1395_v11, %v1379_v44 }
 0x31c   : > { %v1396_v29 = vadd.f32 1.0, %v4197_v20  ;;  %v1413_v49 = vmul.f32 %v1397_v30, %v1381_v57 }
 0x31d   : > { %v4199_v46 = vpop.eup %4198  ;;  %v1410_v58 = vmul.f32 %v1394_v31, %v1378_v54  ;;  %v1419_v63 = vpack.c.bf16 %v1411_v39, %v1407_v1 }
 0x31e   : > { %v1412_v48 = vmul.f32 %v1396_v29, %v1380_v51  ;;  %v1398_v55 = vadd.f32 1.0, %v4199_v46  ;;  %v1421_v45 = vpack.c.bf16 %v1413_v49, %v1409_v61  ;;  %v3970_v49 = vld [vmem:[%s5882_s11 + $0xe4] ss:$16 sps:$4 sm:$0xff]   ;;  %v3979_v61 = vld [vmem:[%s5882_s11 + $0xcc] ss:$16 sps:$4 sm:$0xff]  }
 0x31f   : > { %2483 = vmatprep.subr.bf16.mxu1 %v3970_v49 }
 0x320   : > { %v1420_v60 = vpack.c.bf16 %v1412_v48, %v1408_v41  ;;  %v1414_v47 = vmul.f32 %v1398_v55, %v1382_v12 }
 0x322   : > { %1849 = vmatprep.mubr.bf16.mxu1 %v1420_v60  ;;  %v1422_v2 = vpack.c.bf16 %v1414_v47, %v1410_v58  ;;  %v3971_v58 = vld [vmem:[%s5882_s11 + $0xe8] ss:$16 sps:$4 sm:$0xff]   ;;  %v3973_v47 = vld [vmem:[%s5882_s11 + $0xec] ss:$16 sps:$4 sm:$0xff]  }
 0x323   : > { %1850 = vmatmul.mubr.bf16.gmra.mxu1 %v1419_v63  ;;  %v3976_v63 = vld [vmem:[%s5882_s11 + $0xc4] ss:$16 sps:$4 sm:$0xff]   ;;  %2536 = vmatprep.subr.bf16.mxu0 %v3973_v47 }
 0x324   : > { %1902 = vmatprep.mubr.bf16.mxu0 %v1422_v2  ;;  %v3974_v2 = vld [vmem:[%s5882_s11 + $0xc0] ss:$16 sps:$4 sm:$0xff]   ;;  %2537 = vmatpush1.bf16.msra.mxu0 %v3971_v58 }
 0x325   : > { %1903 = vmatmul.mubr.bf16.gmra.mxu0 %v1421_v45  ;;  %v3977_v45 = vld [vmem:[%s5882_s11 + $0xc8] ss:$16 sps:$4 sm:$0xff]   ;;  %2538 = vmatprep.subr.bf16.mxu0 %v3979_v61 }
 0x328   : > { %2539 = vmatpush1.bf16.msra.mxu0 %v3977_v45 }
 0x3d5   : > { %v1841_v7 = vpop.f32.mrf.mxu1 }
 0x3d6   : > { %v1894_v3 = vpop.f32.mrf.mxu0 }
 0x3d7   : > { %v1843_v59 = vpop.f32.mrf.mxu1  ;;  %v1895_v0 = vadd.f32 %v1894_v3, %v1841_v7  ;;  %v3982_v7 = vld [vmem:[%s5882_s11 + $0xa4] ss:$16 sps:$4 sm:$0xff]   ;;  %v3985_v3 = vld [vmem:[%s5882_s11 + $0xac] ss:$16 sps:$4 sm:$0xff]  }
 0x3d8   : > { %v1896_v13 = vpop.f32.mrf.mxu0  ;;  %2540 = vmatprep.subr.bf16.mxu0 %v3985_v3 }
 0x3d9   : > { %v1845_v4 = vpop.f32.mrf.mxu1  ;;  %v1913_v5 = vadd.f32 %v1895_v0, %v4505_v22  ;;  %v1897_v36 = vadd.f32 %v1896_v13, %v1843_v59  ;;  %v3983_v59 = vld [vmem:[%s5882_s11 + $0xa8] ss:$16 sps:$4 sm:$0xff]   ;;  %v3988_v0 = vld [vmem:[%s5882_s11 + $0x84] ss:$16 sps:$4 sm:$0xff]   ;;  %v3991_v13 = vld [vmem:[%s5882_s11 + $0x8c] ss:$16 sps:$4 sm:$0xff]  }
 0x3da   : > { %v1898_v25 = vpop.f32.mrf.mxu0  ;;  %2541 = vmatpush1.bf16.msra.mxu0 %v3983_v59 }
 0x3db   : > { %v1847_v8 = vpop.f32.mrf.mxu1  ;;  %v1914_v62 = vadd.f32 %v1897_v36, %v4507_v23  ;;  %v1899_v9 = vadd.f32 %v1898_v25, %v1845_v4  ;;  %v5129_v35 = vadd.f32 %v1926_v6, %v1913_v5  ;;  %v3986_v4 = vld [vmem:[%s5882_s11 + $0x80] ss:$16 sps:$4 sm:$0xff]   ;;  %v3989_v5 = vld [vmem:[%s5882_s11 + $0x88] ss:$16 sps:$4 sm:$0xff]   ;;  %2542 = vmatprep.subr.bf16.mxu0 %v3991_v13  ;;  %v3997_v36 = vld [vmem:[%s5882_s11 + $0x6c] ss:$16 sps:$4 sm:$0xff]  }
 0x3dc   : > { %v1900_v17 = vpop.f32.mrf.mxu0  ;;  %v3995_v25 = vld [vmem:[%s5882_s11 + $0x68] ss:$16 sps:$4 sm:$0xff]   ;;  %v4022_v13 = vld [vmem:[%s5882_s11 + $0x1c0] ss:$16 sps:$4 sm:$0xff]  }
 0x3dd   : > { %v5131_v10 = vadd.f32 %v1930_v50, %v1914_v62  ;;  %v1915_v18 = vadd.f32 %v1899_v9, %v4511_v27  ;;  %v1901_v22 = vadd.f32 %v1900_v17, %v1847_v8  ;;  %v4000_v8 = vld [vmem:[%s5882_s11 + $0x44] ss:$16 sps:$4 sm:$0xff]   ;;  %v4003_v62 = vld [vmem:[%s5882_s11 + $0x4c] ss:$16 sps:$4 sm:$0xff]   ;;  %v3998_v9 = vld [vmem:[%s5882_s11 + $0x40] ss:$16 sps:$4 sm:$0xff]  }
 0x3de   : > { %2543 = vmatpush1.bf16.msra.mxu0 %v3989_v5  ;;  %v4001_v17 = vld [vmem:[%s5882_s11 + $0x48] ss:$16 sps:$4 sm:$0xff]  }
 0x3df   : > { %v3708_v24 = vpack.c.bf16 %v5131_v10, %v5129_v35  ;;  %v1916_v11 = vadd.f32 %v1901_v22, %v4513_v28  ;;  %v1969_v52 = vadd.f32 %v5131_v10, %v5129_v35  ;;  %v5144_v23 = vadd.f32 %v1926_v6, %v1915_v18  ;;  %2544 = vmatprep.subr.bf16.mxu0 %v3997_v36  ;;  %v4006_v18 = vld [vmem:[%s5882_s11 + $0x24] ss:$16 sps:$4 sm:$0xff]   ;;  %v4009_v22 = vld [vmem:[%s5882_s11 + $0x2c] ss:$16 sps:$4 sm:$0xff]   ;;  %v4025_v5 = vld [vmem:[%s5882_s11 + $0x1c8] ss:$16 sps:$4 sm:$0xff]  }
 0x3e0   : > { %v4028_v36 = vld [vmem:[%s5882_s11 + $0x1a0] ss:$16 sps:$4 sm:$0xff]  }
 0x3e1   : > { %1965 = vst [vmem:[%s5141_s18] sm:$0xff] %v3708_v24  ;;  %v5146_v19 = vadd.f32 %v1930_v50, %v1916_v11  ;;  %1970 = vadd.xlane.f32.xlu0 %v1969_v52  ;;  %v4004_v24 = vld [vmem:[%s5882_s11 + $0x20] ss:$16 sps:$4 sm:$0xff]   ;;  %v4007_v11 = vld [vmem:[%s5882_s11 + $0x28] ss:$16 sps:$4 sm:$0xff]   ;;  %v4012_v52 = vld [vmem:[%s5882_s11 + $0x4] ss:$16 sps:$4 sm:$0xff]  }
 0x3e2   : > { %2545 = vmatpush1.bf16.msra.mxu0 %v3995_v25  ;;  %v4031_v25 = vld [vmem:[%s5882_s11 + $0x1a8] ss:$16 sps:$4 sm:$0xff]  }
 0x3e3   : > { %v1851_v27 = vpop.f32.mrf.mxu1  ;;  %v3709_v20 = vpack.c.bf16 %v5146_v19, %v5144_v23  ;;  %v1972_v28 = vadd.f32 %v5146_v19, %v5144_v23  ;;  %2546 = vmatprep.subr.bf16.mxu0 %v4003_v62  ;;  %v4036_v62 = vld [vmem:[%s5882_s11 + $0x184] ss:$16 sps:$4 sm:$0xff]  }
 0x3e5   : > { %v1853_v44 = vpop.f32.mrf.mxu1  ;;  %1966 = vst [vmem:[%s5141_s18 + $0x8] sm:$0xff] %v3709_v20  ;;  %v1904_v21 = vpop.f32.mrf.mxu0  ;;  %1973 = vadd.xlane.f32.xlu1 %v1972_v28  ;;  %v4010_v20 = vld [vmem:[%s5882_s11] ss:$16 sps:$4 sm:$0xff]   ;;  %v4013_v28 = vld [vmem:[%s5882_s11 + $0x8] ss:$16 sps:$4 sm:$0xff]  }
 0x3e6   : > { %v1905_v26 = vadd.f32 %v1904_v21, %v1851_v27  ;;  %2547 = vmatpush1.bf16.msra.mxu0 %v4001_v17  ;;  %v4015_v27 = vld [vmem:[%s5882_s11 + $0xc] ss:$16 sps:$4 sm:$0xff]   ;;  %v4034_v17 = vld [vmem:[%s5882_s11 + $0x180] ss:$16 sps:$4 sm:$0xff]  }
 0x3e7   : > { %v1855_v51 = vpop.f32.mrf.mxu1  ;;  %v1906_v29 = vpop.f32.mrf.mxu0  ;;  %2548 = vmatprep.subr.bf16.mxu0 %v4009_v22  ;;  %v4021_v21 = vld [vmem:[%s5882_s11 + $0x1ec] ss:$16 sps:$4 sm:$0xff]   ;;  %v4042_v22 = vld [vmem:[%s5882_s11 + $0x164] ss:$16 sps:$4 sm:$0xff]  }
 0x3e8   : > { %v1917_v30 = vadd.f32 %v1905_v26, %v4517_v32  ;;  %v1907_v31 = vadd.f32 %v1906_v29, %v1853_v44  ;;  %v4018_v44 = vld [vmem:[%s5882_s11 + $0x1e4] ss:$16 sps:$4 sm:$0xff]   ;;  %v4016_v26 = vld [vmem:[%s5882_s11 + $0x1e0] ss:$16 sps:$4 sm:$0xff]  }
 0x3e9   : > { %v1908_v43 = vpop.f32.mrf.mxu0  ;;  %v1857_v39 = vpop.f32.mrf.mxu1 }
 0x3ea   : > { %v1918_v46 = vadd.f32 %v1907_v31, %v4519_v33  ;;  %v1909_v41 = vadd.f32 %v1908_v43, %v1855_v51  ;;  %v5155_v57 = vadd.f32 %v1926_v6, %v1917_v30  ;;  %2549 = vmatpush1.bf16.msra.mxu0 %v4007_v11  ;;  %v4019_v51 = vld [vmem:[%s5882_s11 + $0x1e8] ss:$16 sps:$4 sm:$0xff]   ;;  %v4040_v11 = vld [vmem:[%s5882_s11 + $0x160] ss:$16 sps:$4 sm:$0xff]  }
 0x3eb   : > { %v1910_v48 = vpop.f32.mrf.mxu0  ;;  %2550 = vmatprep.subr.bf16.mxu0 %v4015_v27  ;;  %v4048_v27 = vld [vmem:[%s5882_s11 + $0x144] ss:$16 sps:$4 sm:$0xff]  }
 0x3ec   : > { %v5157_v53 = vadd.f32 %v1930_v50, %v1918_v46  ;;  %v1919_v54 = vadd.f32 %v1909_v41, %v4523_v37  ;;  %v1911_v12 = vadd.f32 %v1910_v48, %v1857_v39 }
 0x3ee   : > { %v3710_v55 = vpack.c.bf16 %v5157_v53, %v5155_v57  ;;  %v1920_v32 = vadd.f32 %v1911_v12, %v4525_v38  ;;  %v1975_v1 = vadd.f32 %v5157_v53, %v5155_v57  ;;  %v5166_v33 = vadd.f32 %v1926_v6, %v1919_v54  ;;  %v3968_v38 = vld [vmem:[%s5882_s11 + $0xe0] ss:$16 sps:$4 sm:$0xff]   ;;  %v3994_v6 = vld [vmem:[%s5882_s11 + $0x64] ss:$16 sps:$4 sm:$0xff]   ;;  %2551 = vmatpush1.bf16.msra.mxu0 %v4013_v28 }
 0x3ef   : > { %2484 = vmatpush1.bf16.msra.mxu1 %v3968_v38  ;;  %2552 = vmatprep.subr.bf16.mxu0 %v4021_v21  ;;  %v4046_v28 = vld [vmem:[%s5882_s11 + $0x140] ss:$16 sps:$4 sm:$0xff]   ;;  %v4054_v21 = vld [vmem:[%s5882_s11 + $0x124] ss:$16 sps:$4 sm:$0xff]  }
 0x3f0   : > { %1967 = vst [vmem:[%s5141_s18 + $0x10] sm:$0xff] %v3710_v55  ;;  %v5168_v60 = vadd.f32 %v1930_v50, %v1920_v32  ;;  %1976 = vadd.xlane.f32.xlu0 %v1975_v1  ;;  %2485 = vmatprep.subr.bf16.mxu1 %v3976_v63  ;;  %v3992_v50 = vld [vmem:[%s5882_s11 + $0x60] ss:$16 sps:$4 sm:$0xff]  }
 0x3f2   : > { %v3711_v34 = vpack.c.bf16 %v5168_v60, %v5166_v33  ;;  %v1978_v37 = vadd.f32 %v5168_v60, %v5166_v33  ;;  %2553 = vmatpush2.bf16.msra.mxu0 %v4019_v51  ;;  %v4052_v51 = vld [vmem:[%s5882_s11 + $0x120] ss:$16 sps:$4 sm:$0xff]  }
 0x3f3   : > { %2486 = vmatpush1.bf16.msra.mxu1 %v3974_v2 }
 0x3f4   : > { %1968 = vst [vmem:[%s5141_s18 + $0x18] sm:$0xff] %v3711_v34  ;;  %1979 = vadd.xlane.f32.xlu1 %v1978_v37  ;;  %2487 = vmatprep.subr.bf16.mxu1 %v3982_v7 }
 0x3f7   : > { %2488 = vmatpush1.bf16.msra.mxu1 %v3980_v56 }
 0x3f8   : > { %2489 = vmatprep.subr.bf16.mxu1 %v3988_v0 }
 0x3fb   : > { %2490 = vmatpush1.bf16.msra.mxu1 %v3986_v4  ;;  %v4024_v4 = vld [vmem:[%s5882_s11 + $0x1c4] ss:$16 sps:$4 sm:$0xff]  }
 0x3fc   : > { %2491 = vmatprep.subr.bf16.mxu1 %v3994_v6  ;;  %v4027_v6 = vld [vmem:[%s5882_s11 + $0x1cc] ss:$16 sps:$4 sm:$0xff]  }
 0x3fd   : > { %2554 = vmatprep.subr.bf16.mxu0 %v4027_v6  ;;  %v2053_v6 = vld [vmem:[%s5881_s10] sm:$0x3] }
 0x3fe   : > { %2555 = vmatpush2.bf16.msra.mxu0 %v4025_v5 }
 0x3ff   : > { %2492 = vmatpush1.bf16.msra.mxu1 %v3992_v50  ;;  %v4030_v50 = vld [vmem:[%s5882_s11 + $0x1a4] ss:$16 sps:$4 sm:$0xff]  }
 0x400   : > { %2493 = vmatprep.subr.bf16.mxu1 %v4000_v8  ;;  %v4033_v8 = vld [vmem:[%s5882_s11 + $0x1ac] ss:$16 sps:$4 sm:$0xff]  }
 0x401   : > { %2556 = vmatprep.subr.bf16.mxu0 %v4033_v8  ;;  %v2058_v8 = vrot.slane %v2053_v6, %v4495_v15 }
 0x402   : > { %2557 = vmatpush2.bf16.msra.mxu0 %v4031_v25 }
 0x403   : > { %2494 = vmatpush1.bf16.msra.mxu1 %v3998_v9  ;;  %v4039_v9 = vld [vmem:[%s5882_s11 + $0x18c] ss:$16 sps:$4 sm:$0xff]  }
 0x404   : > { %2495 = vmatprep.subr.bf16.mxu1 %v4006_v18  ;;  %v4037_v18 = vld [vmem:[%s5882_s11 + $0x188] ss:$16 sps:$4 sm:$0xff]   ;;  %2558 = vmatprep.subr.bf16.mxu0 %v4039_v9 }
 0x406   : > { %2559 = vmatpush2.bf16.msra.mxu0 %v4037_v18 }
 0x407   : > { %2496 = vmatpush1.bf16.msra.mxu1 %v4004_v24  ;;  %v4045_v24 = vld [vmem:[%s5882_s11 + $0x16c] ss:$16 sps:$4 sm:$0xff]  }
 0x408   : > { %2497 = vmatprep.subr.bf16.mxu1 %v4012_v52  ;;  %v4043_v52 = vld [vmem:[%s5882_s11 + $0x168] ss:$16 sps:$4 sm:$0xff]   ;;  %2560 = vmatprep.subr.bf16.mxu0 %v4045_v24 }
 0x40a   : > { %2561 = vmatpush2.bf16.msra.mxu0 %v4043_v52 }
 0x40b   : > { %2498 = vmatpush1.bf16.msra.mxu1 %v4010_v20  ;;  %v4051_v20 = vld [vmem:[%s5882_s11 + $0x14c] ss:$16 sps:$4 sm:$0xff]  }
 0x40c   : > { %2499 = vmatprep.subr.bf16.mxu1 %v4018_v44  ;;  %v4049_v44 = vld [vmem:[%s5882_s11 + $0x148] ss:$16 sps:$4 sm:$0xff]   ;;  %2562 = vmatprep.subr.bf16.mxu0 %v4051_v20 }
 0x40e   : > { %2563 = vmatpush2.bf16.msra.mxu0 %v4049_v44  ;;  %v4064_v44 = vld [vmem:[%s5884_s13 + $0x70] ss:$8 sps:$4 sm:$0xff]  }
 0x40f   : > { %2500 = vmatpush2.bf16.msra.mxu1 %v4016_v26  ;;  %v4057_v26 = vld [vmem:[%s5882_s11 + $0x12c] ss:$16 sps:$4 sm:$0xff]  }
 0x410   : > { %2501 = vmatprep.subr.bf16.mxu1 %v4024_v4  ;;  %2564 = vmatprep.subr.bf16.mxu0 %v4057_v26 }
 0x413   : > { %2502 = vmatpush2.bf16.msra.mxu1 %v4022_v13 }
 0x414   : > { %2503 = vmatprep.subr.bf16.mxu1 %v4030_v50 }
 0x417   : > { %2504 = vmatpush2.bf16.msra.mxu1 %v4028_v36 }
 0x418   : > { %2505 = vmatprep.subr.bf16.mxu1 %v4036_v62  ;;  %v2062_v62 = vrot.slane %v2053_v6, %v4498_v16  ;;  %v4091_v6 = vld [vmem:[%s5884_s13 + $0x130] ss:$8 sps:$4 sm:$0xff]  }
 0x41b   : > { %2506 = vmatpush2.bf16.msra.mxu1 %v4034_v17 }
 0x41c   : > { %2507 = vmatprep.subr.bf16.mxu1 %v4042_v22 }
 0x41f   : > { %2508 = vmatpush2.bf16.msra.mxu1 %v4040_v11 }
 0x420   : > { %2509 = vmatprep.subr.bf16.mxu1 %v4048_v27 }
 0x423   : > { %2510 = vmatpush2.bf16.msra.mxu1 %v4046_v28 }
 0x424   : > { %2511 = vmatprep.subr.bf16.mxu1 %v4054_v21  ;;  %v4075_v21 = vld [vmem:[%s5884_s13 + $0x164] ss:$8 sps:$4 sm:$0xff]  }
 0x427   : > { %2512 = vmatpush2.bf16.msra.mxu1 %v4052_v51  ;;  %v4070_v51 = vld [vmem:[%s5884_s13 + $0x60] ss:$8 sps:$4 sm:$0xff]  }
 0x46a   : > { %v1971_v29 = vpop.xlane.xlu0 %1970 }
 0x46b   : > { %v1981_v30 = vmul.f32 0.00390625, %v1971_v29  ;;  %v4055_v29 = vld [vmem:[%s5882_s11 + $0x128] ss:$16 sps:$4 sm:$0xff]  }
 0x46c   : > { %2565 = vmatpush2.bf16.msra.mxu0 %v4055_v29  ;;  %v4073_v29 = vld [vmem:[%s5884_s13 + $0x160] ss:$8 sps:$4 sm:$0xff]  }
 0x46d   : > { %v5284_v31 = vsub.f32 %v5129_v35, %v1981_v30  ;;  %v5287_v43 = vsub.f32 %v5131_v10, %v1981_v30  ;;  %v4060_v30 = vld [vmem:[%s5882_s11 + $0x104] ss:$16 sps:$4 sm:$0xff]  }
 0x46e   : > { %v1974_v39 = vpop.xlane.xlu1 %1973  ;;  %2513 = vmatprep.subr.bf16.mxu1 %v4060_v30 }
 0x46f   : > { %v1982_v46 = vmul.f32 0.00390625, %v1974_v39  ;;  %v1993_v41 = vmul.f32 %v5284_v31, %v5284_v31  ;;  %v1994_v48 = vmul.f32 %v5287_v43, %v5287_v43  ;;  %v4063_v39 = vld [vmem:[%s5882_s11 + $0x10c] ss:$16 sps:$4 sm:$0xff]  }
 0x470   : > { %2566 = vmatprep.subr.bf16.mxu0 %v4063_v39 }
 0x471   : > { %v5294_v54 = vsub.f32 %v5144_v23, %v1982_v46  ;;  %v5297_v12 = vsub.f32 %v5146_v19, %v1982_v46  ;;  %v2001_v55 = vadd.f32 %v1994_v48, %v1993_v41  ;;  %v4058_v46 = vld [vmem:[%s5882_s11 + $0x100] ss:$16 sps:$4 sm:$0xff]   ;;  %v4061_v41 = vld [vmem:[%s5882_s11 + $0x108] ss:$16 sps:$4 sm:$0xff]   ;;  %v4066_v48 = vld [vmem:[%s5884_s13 + $0x74] ss:$8 sps:$4 sm:$0xff]  }
 0x472   : > { %2514 = vmatpush2.bf16.msra.mxu1 %v4058_v46  ;;  %2567 = vmatpush2.bf16.msra.mxu0 %v4061_v41  ;;  %v4078_v46 = vld [vmem:[%s5884_s13 + $0x54] ss:$8 sps:$4 sm:$0xff]  }
 0x473   : > { %2002 = vadd.xlane.f32.xlu0 %v2001_v55  ;;  %v1995_v32 = vmul.f32 %v5294_v54, %v5294_v54  ;;  %v1996_v1 = vmul.f32 %v5297_v12, %v5297_v12  ;;  %v4069_v55 = vld [vmem:[%s5884_s13 + $0x174] ss:$8 sps:$4 sm:$0xff]   ;;  %3125 = vmatprep.subr.bf16.mxu1 %v4066_v48 }
 0x474   : > { %3178 = vmatprep.subr.bf16.mxu0 %v4069_v55  ;;  %v4081_v41 = vld [vmem:[%s5884_s13 + $0x154] ss:$8 sps:$4 sm:$0xff]  }
 0x475   : > { %v2004_v34 = vadd.f32 %v1996_v1, %v1995_v32 }
 0x477   : > { %2005 = vadd.xlane.f32.xlu1 %v2004_v34 }
 0x479   : > { %v1977_v37 = vpop.xlane.xlu0 %1976 }
 0x47a   : > { %v1983_v38 = vmul.f32 0.00390625, %v1977_v37 }
 0x47c   : > { %v5304_v49 = vsub.f32 %v5155_v57, %v1983_v38  ;;  %v5307_v58 = vsub.f32 %v5157_v53, %v1983_v38 }
 0x47d   : > { %v1980_v47 = vpop.xlane.xlu1 %1979 }
 0x47e   : > { %v1984_v63 = vmul.f32 0.00390625, %v1980_v47  ;;  %v1997_v61 = vmul.f32 %v5304_v49, %v5304_v49  ;;  %v1998_v2 = vmul.f32 %v5307_v58, %v5307_v58 }
 0x480   : > { %v5314_v45 = vsub.f32 %v5166_v33, %v1984_v63  ;;  %v5317_v7 = vsub.f32 %v5168_v60, %v1984_v63  ;;  %v2007_v3 = vadd.f32 %v1998_v2, %v1997_v61  ;;  %v2033_v2 = vld [vmem:[%s5880_s9] sm:$0x3] }
 0x481   : > { %v2038_v4 = vrot.slane %v2033_v2, %v4495_v15  ;;  %v2042_v5 = vrot.slane %v2033_v2, %v4498_v16 }
 0x482   : > { %2008 = vadd.xlane.f32.xlu0 %v2007_v3  ;;  %v1999_v56 = vmul.f32 %v5314_v45, %v5314_v45  ;;  %v2000_v59 = vmul.f32 %v5317_v7, %v5317_v7 }
 0x484   : > { %v2010_v0 = vadd.f32 %v2000_v59, %v1999_v56 }
 0x486   : > { %2011 = vadd.xlane.f32.xlu1 %v2010_v0 }
 0x4fc   : > { %v2003_v32 = vpop.xlane.xlu0 %2002 }
 0x4fd   : > { %v2013_v1 = vmul.f32 0.00390625, %v2003_v32 }
 0x4ff   : > { %v2017_v34 = vadd.f32 1e-06, %v2013_v1 }
 0x500   : > { %v2006_v37 = vpop.xlane.xlu1 %2005 }
 0x501   : > { %4200 = vrsqrt.f32 %v2017_v34  ;;  %v2014_v38 = vmul.f32 0.00390625, %v2006_v37  ;;  %v4084_v37 = vld [vmem:[%s5884_s13 + $0x44] ss:$8 sps:$4 sm:$0xff]  }
 0x503   : > { %v2018_v47 = vadd.f32 1e-06, %v2014_v38  ;;  %v4087_v38 = vld [vmem:[%s5884_s13 + $0x144] ss:$8 sps:$4 sm:$0xff]  }
 0x505   : > { %4202 = vrsqrt.f32 %v2018_v47 }
 0x50b   : > { %v2009_v63 = vpop.xlane.xlu0 %2008 }
 0x50c   : > { %v2015_v61 = vmul.f32 0.00390625, %v2009_v63 }
 0x50e   : > { %v4201_v3 = vpop.eup %4200  ;;  %v2019_v56 = vadd.f32 1e-06, %v2015_v61 }
 0x50f   : > { %v2025_v59 = vmul.f32 %v4201_v3, %v5284_v31  ;;  %v2012_v0 = vpop.xlane.xlu1 %2011  ;;  %v2026_v13 = vmul.f32 %v4201_v3, %v5287_v43 }
 0x510   : > { %4204 = vrsqrt.f32 %v2019_v56  ;;  %v2016_v36 = vmul.f32 0.00390625, %v2012_v0 }
 0x511   : > { %v2046_v9 = vmul.f32 %v2042_v5, %v2026_v13  ;;  %v2045_v17 = vmul.f32 %v2038_v4, %v2025_v59  ;;  %v4090_v13 = vld [vmem:[%s5884_s13 + $0x34] ss:$8 sps:$4 sm:$0xff]  }
 0x512   : > { %v4203_v50 = vpop.eup %4202  ;;  %v2020_v25 = vadd.f32 1e-06, %v2016_v36  ;;  %v4096_v36 = vld [vmem:[%s5884_s13 + $0x24] ss:$8 sps:$4 sm:$0xff]  }
 0x513   : > { %v2027_v31 = vmul.f32 %v4203_v50, %v5294_v54  ;;  %v2028_v43 = vmul.f32 %v4203_v50, %v5297_v12  ;;  %v2066_v24 = vadd.f32 %v2062_v62, %v2046_v9  ;;  %v2065_v52 = vadd.f32 %v2058_v8, %v2045_v17  ;;  %v4067_v54 = vld [vmem:[%s5884_s13 + $0x170] ss:$8 sps:$4 sm:$0xff]   ;;  %v4072_v12 = vld [vmem:[%s5884_s13 + $0x64] ss:$8 sps:$4 sm:$0xff]  }
 0x514   : > { %4206 = vrsqrt.f32 %v2020_v25  ;;  %v4099_v50 = vld [vmem:[%s5884_s13 + $0x124] ss:$8 sps:$4 sm:$0xff]   ;;  %v4094_v25 = vld [vmem:[%s5884_s13 + $0x20] ss:$8 sps:$4 sm:$0xff]   ;;  %v4103_v9 = vld [vmem:[%s5884_s13 + $0x110] ss:$8 sps:$4 sm:$0xff]  }
 0x515   : > { %v2048_v18 = vmul.f32 %v2042_v5, %v2028_v43  ;;  %v2047_v22 = vmul.f32 %v2038_v4, %v2027_v31  ;;  %v4105_v31 = vld [vmem:[%s5884_s13 + $0x114] ss:$8 sps:$4 sm:$0xff]   ;;  %v4100_v43 = vld [vmem:[%s5884_s13 + $0x10] ss:$8 sps:$4 sm:$0xff]   ;;  %v4108_v17 = vld [vmem:[%s5884_s13 + $0x4] ss:$8 sps:$4 sm:$0xff]  }
 0x517   : > { %v2068_v11 = vadd.f32 %v2062_v62, %v2048_v18  ;;  %v2067_v27 = vadd.f32 %v2058_v8, %v2047_v22  ;;  %v4111_v18 = vld [vmem:[%s5884_s13 + $0x104] ss:$8 sps:$4 sm:$0xff]   ;;  %v4106_v22 = vld [vmem:[%s5884_s13] ss:$8 sps:$4 sm:$0xff]  }
 0x519   : > { %v2074_v20 = vpack.c.bf16 %v2068_v11, %v2066_v24  ;;  %v2073_v28 = vpack.c.bf16 %v2067_v27, %v2065_v52  ;;  %v4109_v24 = vld [vmem:[%s5884_s13 + $0x100] ss:$8 sps:$4 sm:$0xff]   ;;  %v4114_v11 = vld [vmem:[%s5884_s13 + $0xf4] ss:$8 sps:$4 sm:$0xff]   ;;  %v4112_v27 = vld [vmem:[%s5884_s13 + $0xf0] ss:$8 sps:$4 sm:$0xff]  }
 0x51a   : > { %v4117_v52 = vld [vmem:[%s5884_s13 + $0x1f4] ss:$8 sps:$4 sm:$0xff]  }
 0x51b   : > { %2515 = vmatprep.mubr.bf16.mxu1 %v2074_v20  ;;  %2568 = vmatprep.mubr.bf16.mxu0 %v2074_v20  ;;  %v4115_v20 = vld [vmem:[%s5884_s13 + $0x1f0] ss:$8 sps:$4 sm:$0xff]  }
 0x51c   : > { %2516 = vmatmul.mubr.bf16.vlgmr.msra.gmra.mxu1 %v2073_v28  ;;  %2569 = vmatmul.mubr.bf16.vlgmr.msra.gmra.mxu0 %v2073_v28  ;;  %v4120_v28 = vld [vmem:[%s5884_s13 + $0xe4] ss:$8 sps:$4 sm:$0xff]  }
 0x51d   : > { %v4205_v26 = vpop.eup %4204  ;;  %3126 = vmatpush1.bf16.msra.mxu1 %v4064_v44  ;;  %3179 = vmatpush1.bf16.msra.mxu0 %v4067_v54  ;;  %v4123_v44 = vld [vmem:[%s5884_s13 + $0x1e4] ss:$8 sps:$4 sm:$0xff]   ;;  %v4118_v54 = vld [vmem:[%s5884_s13 + $0xe0] ss:$8 sps:$4 sm:$0xff]  }
 0x51e   : > { %v2030_v30 = vmul.f32 %v4205_v26, %v5307_v58  ;;  %v2029_v39 = vmul.f32 %v4205_v26, %v5304_v49  ;;  %3127 = vmatprep.subr.bf16.mxu1 %v4072_v12  ;;  %3180 = vmatprep.subr.bf16.mxu0 %v4075_v21  ;;  %v4076_v58 = vld [vmem:[%s5884_s13 + $0x50] ss:$8 sps:$4 sm:$0xff]   ;;  %v4121_v12 = vld [vmem:[%s5884_s13 + $0x1e0] ss:$8 sps:$4 sm:$0xff]   ;;  %v4126_v21 = vld [vmem:[%s5884_s13 + $0xd4] ss:$8 sps:$4 sm:$0xff]  }
 0x51f   : > { %v4079_v49 = vld [vmem:[%s5884_s13 + $0x150] ss:$8 sps:$4 sm:$0xff]   ;;  %v4129_v26 = vld [vmem:[%s5884_s13 + $0x1d4] ss:$8 sps:$4 sm:$0xff]  }
 0x520   : > { %v2050_v55 = vmul.f32 %v2042_v5, %v2030_v30  ;;  %v2049_v34 = vmul.f32 %v2038_v4, %v2029_v39  ;;  %v4130_v30 = vld [vmem:[%s5884_s13 + $0xc0] ss:$8 sps:$4 sm:$0xff]   ;;  %v4132_v39 = vld [vmem:[%s5884_s13 + $0xc4] ss:$8 sps:$4 sm:$0xff]  }
 0x521   : > { %v4207_v48 = vpop.eup %4206  ;;  %3128 = vmatpush1.bf16.msra.mxu1 %v4070_v51  ;;  %3181 = vmatpush1.bf16.msra.mxu0 %v4073_v29  ;;  %v4124_v51 = vld [vmem:[%s5884_s13 + $0xd0] ss:$8 sps:$4 sm:$0xff]  }
 0x522   : > { %v2032_v32 = vmul.f32 %v4207_v48, %v5317_v7  ;;  %v2031_v1 = vmul.f32 %v4207_v48, %v5314_v45  ;;  %3129 = vmatprep.subr.bf16.mxu1 %v4078_v46  ;;  %3182 = vmatprep.subr.bf16.mxu0 %v4081_v41  ;;  %v2070_v61 = vadd.f32 %v2062_v62, %v2050_v55  ;;  %v4082_v45 = vld [vmem:[%s5884_s13 + $0x40] ss:$8 sps:$4 sm:$0xff]   ;;  %v4127_v29 = vld [vmem:[%s5884_s13 + $0x1d0] ss:$8 sps:$4 sm:$0xff]   ;;  %v4135_v41 = vld [vmem:[%s5884_s13 + $0x1c4] ss:$8 sps:$4 sm:$0xff]  }
 0x523   : > { %v4085_v7 = vld [vmem:[%s5884_s13 + $0x140] ss:$8 sps:$4 sm:$0xff]   ;;  %v2069_v3 = vadd.f32 %v2058_v8, %v2049_v34  ;;  %v4138_v48 = vld [vmem:[%s5884_s13 + $0xb4] ss:$8 sps:$4 sm:$0xff]  }
 0x524   : > { %v2052_v47 = vmul.f32 %v2042_v5, %v2032_v32  ;;  %v2051_v63 = vmul.f32 %v2038_v4, %v2031_v1  ;;  %v4093_v4 = vld [vmem:[%s5884_s13 + $0x134] ss:$8 sps:$4 sm:$0xff]   ;;  %v4088_v5 = vld [vmem:[%s5884_s13 + $0x30] ss:$8 sps:$4 sm:$0xff]   ;;  %v4133_v46 = vld [vmem:[%s5884_s13 + $0x1c0] ss:$8 sps:$4 sm:$0xff]  }
 0x525   : > { %3130 = vmatpush1.bf16.msra.mxu1 %v4076_v58  ;;  %3183 = vmatpush1.bf16.msra.mxu0 %v4079_v49  ;;  %v4141_v55 = vld [vmem:[%s5884_s13 + $0x1b4] ss:$8 sps:$4 sm:$0xff]   ;;  %v4136_v58 = vld [vmem:[%s5884_s13 + $0xb0] ss:$8 sps:$4 sm:$0xff]   ;;  %v4144_v32 = vld [vmem:[%s5884_s13 + $0xa4] ss:$8 sps:$4 sm:$0xff]  }
 0x526   : > { %v2072_v2 = vadd.f32 %v2062_v62, %v2052_v47  ;;  %v2071_v56 = vadd.f32 %v2058_v8, %v2051_v63  ;;  %3131 = vmatprep.subr.bf16.mxu1 %v4084_v37  ;;  %3184 = vmatprep.subr.bf16.mxu0 %v4087_v38  ;;  %v4097_v8 = vld [vmem:[%s5884_s13 + $0x120] ss:$8 sps:$4 sm:$0xff]   ;;  %v4102_v62 = vld [vmem:[%s5884_s13 + $0x14] ss:$8 sps:$4 sm:$0xff]   ;;  %v4139_v49 = vld [vmem:[%s5884_s13 + $0x1b0] ss:$8 sps:$4 sm:$0xff]  }
 0x527   : > { %v4147_v1 = vld [vmem:[%s5884_s13 + $0x1a4] ss:$8 sps:$4 sm:$0xff]   ;;  %v4142_v34 = vld [vmem:[%s5884_s13 + $0xa0] ss:$8 sps:$4 sm:$0xff]   ;;  %v4150_v38 = vld [vmem:[%s5884_s13 + $0x94] ss:$8 sps:$4 sm:$0xff]  }
 0x528   : > { %v2076_v59 = vpack.c.bf16 %v2072_v2, %v2070_v61  ;;  %v2075_v0 = vpack.c.bf16 %v2071_v56, %v2069_v3  ;;  %v4145_v37 = vld [vmem:[%s5884_s13 + $0x1a0] ss:$8 sps:$4 sm:$0xff]   ;;  %v4153_v47 = vld [vmem:[%s5884_s13 + $0x194] ss:$8 sps:$4 sm:$0xff]   ;;  %v4148_v63 = vld [vmem:[%s5884_s13 + $0x90] ss:$8 sps:$4 sm:$0xff]  }
 0x529   : > { %3132 = vmatpush1.bf16.msra.mxu1 %v4082_v45  ;;  %3185 = vmatpush1.bf16.msra.mxu0 %v4085_v7  ;;  %v4151_v61 = vld [vmem:[%s5884_s13 + $0x190] ss:$8 sps:$4 sm:$0xff]   ;;  %v4156_v45 = vld [vmem:[%s5884_s13 + $0x84] ss:$8 sps:$4 sm:$0xff]   ;;  %v4154_v2 = vld [vmem:[%s5884_s13 + $0x80] ss:$8 sps:$4 sm:$0xff]  }
 0x52a   : > { %2525 = vmatprep.mubr.bf16.mxu1 %v2076_v59  ;;  %2578 = vmatprep.mubr.bf16.mxu0 %v2076_v59  ;;  %v4159_v7 = vld [vmem:[%s5884_s13 + $0x184] ss:$8 sps:$4 sm:$0xff]   ;;  %v4157_v3 = vld [vmem:[%s5884_s13 + $0x180] ss:$8 sps:$4 sm:$0xff]  }
 0x52b   : > { %2526 = vmatmul.mubr.bf16.gmra.mxu1 %v2075_v0  ;;  %2579 = vmatmul.mubr.bf16.gmra.mxu0 %v2075_v0  ;;  %v2141_v56 = vld [vmem:[%s5883_s12] sm:$0xf] }
 0x52c   : > { %3133 = vmatprep.subr.bf16.mxu1 %v4090_v13  ;;  %3186 = vmatprep.subr.bf16.mxu0 %v4093_v4  ;;  %v5621_v59 = vrot.slane %v2141_v56, %v4495_v15  ;;  %v5625_v0 = vrot.slane %v2141_v56, %v835_v40 }
 0x52d   : > { %3134 = vmatpush1.bf16.msra.mxu1 %v4088_v5  ;;  %3187 = vmatpush1.bf16.msra.mxu0 %v4091_v6  ;;  %v5628_v5 = vrot.slane %v2141_v56, %v4498_v16  ;;  %v5632_v6 = vrot.slane %v2141_v56, %v839_v42 }
 0x52e   : > { %3135 = vmatprep.subr.bf16.mxu1 %v4096_v36  ;;  %3188 = vmatprep.subr.bf16.mxu0 %v4099_v50 }
 0x531   : > { %3136 = vmatpush1.bf16.msra.mxu1 %v4094_v25  ;;  %3189 = vmatpush1.bf16.msra.mxu0 %v4097_v8 }
 0x532   : > { %3137 = vmatprep.subr.bf16.mxu1 %v4102_v62  ;;  %3190 = vmatprep.subr.bf16.mxu0 %v4105_v31 }
 0x535   : > { %3138 = vmatpush1.bf16.msra.mxu1 %v4100_v43  ;;  %3191 = vmatpush1.bf16.msra.mxu0 %v4103_v9 }
 0x536   : > { %3139 = vmatprep.subr.bf16.mxu1 %v4108_v17  ;;  %3192 = vmatprep.subr.bf16.mxu0 %v4111_v18 }
 0x539   : > { %3140 = vmatpush1.bf16.msra.mxu1 %v4106_v22  ;;  %3193 = vmatpush1.bf16.msra.mxu0 %v4109_v24 }
 0x53a   : > { %3141 = vmatprep.subr.bf16.mxu1 %v4114_v11  ;;  %3194 = vmatprep.subr.bf16.mxu0 %v4117_v52 }
 0x53d   : > { %3142 = vmatpush2.bf16.msra.mxu1 %v4112_v27  ;;  %3195 = vmatpush2.bf16.msra.mxu0 %v4115_v20 }
 0x53e   : > { %3143 = vmatprep.subr.bf16.mxu1 %v4120_v28  ;;  %3196 = vmatprep.subr.bf16.mxu0 %v4123_v44 }
 0x541   : > { %3144 = vmatpush2.bf16.msra.mxu1 %v4118_v54  ;;  %3197 = vmatpush2.bf16.msra.mxu0 %v4121_v12 }
 0x542   : > { %3145 = vmatprep.subr.bf16.mxu1 %v4126_v21  ;;  %3198 = vmatprep.subr.bf16.mxu0 %v4129_v26 }
 0x545   : > { %3146 = vmatpush2.bf16.msra.mxu1 %v4124_v51  ;;  %3199 = vmatpush2.bf16.msra.mxu0 %v4127_v29 }
 0x546   : > { %3147 = vmatprep.subr.bf16.mxu1 %v4132_v39  ;;  %3200 = vmatprep.subr.bf16.mxu0 %v4135_v41 }
 0x549   : > { %3148 = vmatpush2.bf16.msra.mxu1 %v4130_v30  ;;  %3201 = vmatpush2.bf16.msra.mxu0 %v4133_v46 }
 0x54a   : > { %3149 = vmatprep.subr.bf16.mxu1 %v4138_v48  ;;  %3202 = vmatprep.subr.bf16.mxu0 %v4141_v55 }
 0x54d   : > { %3150 = vmatpush2.bf16.msra.mxu1 %v4136_v58  ;;  %3203 = vmatpush2.bf16.msra.mxu0 %v4139_v49 }
 0x54e   : > { %3151 = vmatprep.subr.bf16.mxu1 %v4144_v32  ;;  %3204 = vmatprep.subr.bf16.mxu0 %v4147_v1 }
 0x551   : > { %3152 = vmatpush2.bf16.msra.mxu1 %v4142_v34  ;;  %3205 = vmatpush2.bf16.msra.mxu0 %v4145_v37 }
 0x552   : > { %3153 = vmatprep.subr.bf16.mxu1 %v4150_v38  ;;  %3206 = vmatprep.subr.bf16.mxu0 %v4153_v47 }
 0x555   : > { %3154 = vmatpush2.bf16.msra.mxu1 %v4148_v63  ;;  %3207 = vmatpush2.bf16.msra.mxu0 %v4151_v61 }
 0x556   : > { %3155 = vmatprep.subr.bf16.mxu1 %v4156_v45  ;;  %3208 = vmatprep.subr.bf16.mxu0 %v4159_v7 }
 0x559   : > { %3156 = vmatpush2.bf16.msra.mxu1 %v4154_v2  ;;  %3209 = vmatpush2.bf16.msra.mxu0 %v4157_v3 }
 0x5dc   : > { %v2517_v13 = vpop.f32.mrf.mxu1  ;;  %v2570_v4 = vpop.f32.mrf.mxu0 }
 0x5dd   : > { %v5635_v36 = vadd.f32 %v2517_v13, %v5621_v59  ;;  %v5638_v50 = vadd.f32 %v2570_v4, %v5625_v0 }
 0x5de   : > { %v2519_v25 = vpop.f32.mrf.mxu1  ;;  %v2572_v8 = vpop.f32.mrf.mxu0 }
 0x5df   : > { %v2589_v40 = vmul.f32 %v5635_v36, %v5635_v36  ;;  %v2591_v62 = vmul.f32 %v5638_v50, %v5638_v50  ;;  %v5645_v31 = vadd.f32 %v2519_v25, %v5628_v5  ;;  %v5648_v14 = vadd.f32 %v2572_v8, %v5632_v6 }
 0x5e0   : > { %v2521_v42 = vpop.f32.mrf.mxu1  ;;  %v2574_v43 = vpop.f32.mrf.mxu0 }
 0x5e1   : > { %v2605_v9 = vmul.f32 %v2589_v40, %v5635_v36  ;;  %v2607_v17 = vmul.f32 %v2591_v62, %v5638_v50  ;;  %v5653_v18 = vadd.f32 %v2521_v42, %v5621_v59  ;;  %v5656_v22 = vadd.f32 %v2574_v43, %v5625_v0 }
 0x5e2   : > { %v2590_v24 = vmul.f32 %v5645_v31, %v5645_v31  ;;  %v2592_v11 = vmul.f32 %v5648_v14, %v5648_v14  ;;  %v2523_v52 = vpop.f32.mrf.mxu1  ;;  %v2576_v44 = vpop.f32.mrf.mxu0 }
 0x5e3   : > { %v2621_v27 = vmul.f32 0.044715, %v2605_v9  ;;  %v2623_v20 = vmul.f32 0.044715, %v2607_v17  ;;  %v2593_v28 = vmul.f32 %v5653_v18, %v5653_v18  ;;  %v2595_v21 = vmul.f32 %v5656_v22, %v5656_v22 }
 0x5e4   : > { %v2606_v54 = vmul.f32 %v2590_v24, %v5645_v31  ;;  %v2608_v12 = vmul.f32 %v2592_v11, %v5648_v14  ;;  %v5672_v30 = vadd.f32 %v2523_v52, %v5628_v5  ;;  %v5676_v48 = vadd.f32 %v2576_v44, %v5632_v6 }
 0x5e5   : > { %v2637_v26 = vadd.f32 %v2621_v27, %v5635_v36  ;;  %v2639_v51 = vadd.f32 %v2623_v20, %v5638_v50  ;;  %v2609_v29 = vmul.f32 %v2593_v28, %v5653_v18  ;;  %v2611_v41 = vmul.f32 %v2595_v21, %v5656_v22 }
 0x5e6   : > { %v2622_v39 = vmul.f32 0.044715, %v2606_v54  ;;  %v2624_v46 = vmul.f32 0.044715, %v2608_v12  ;;  %v2594_v32 = vmul.f32 %v5672_v30, %v5672_v30  ;;  %v2596_v38 = vmul.f32 %v5676_v48, %v5676_v48 }
 0x5e7   : > { %v2653_v55 = vmul.f32 0.7978846, %v2637_v26  ;;  %v2655_v58 = vmul.f32 0.7978846, %v2639_v51  ;;  %v2625_v49 = vmul.f32 0.044715, %v2609_v29 }
 0x5e8   : > { %v2638_v1 = vadd.f32 %v2622_v39, %v5645_v31  ;;  %v2640_v34 = vadd.f32 %v2624_v46, %v5648_v14  ;;  %v2627_v37 = vmul.f32 0.044715, %v2611_v41  ;;  %v2610_v63 = vmul.f32 %v2594_v32, %v5672_v30 }
 0x5e9   : > { %v2641_v47 = vadd.f32 %v2625_v49, %v5653_v18  ;;  %4208 = vtanh.f32 %v2653_v55  ;;  %v2612_v56 = vmul.f32 %v2596_v38, %v5676_v48 }
 0x5ea   : > { %v2654_v61 = vmul.f32 0.7978846, %v2638_v1  ;;  %v2656_v45 = vmul.f32 0.7978846, %v2640_v34  ;;  %v2643_v7 = vadd.f32 %v2627_v37, %v5656_v22  ;;  %4210 = vtanh.f32 %v2655_v58 }
 0x5eb   : > { %v2657_v2 = vmul.f32 0.7978846, %v2641_v47  ;;  %v2626_v3 = vmul.f32 0.044715, %v2610_v63  ;;  %v2527_v13 = vpop.f32.mrf.mxu1  ;;  %v2580_v4 = vpop.f32.mrf.mxu0  ;;  %v2628_v42 = vmul.f32 0.044715, %v2612_v56 }
 0x5ec   : > { %4212 = vtanh.f32 %v2654_v61  ;;  %v2659_v25 = vmul.f32 0.7978846, %v2643_v7  ;;  %v5689_v8 = vadd.f32 %v2527_v13, %v5621_v59  ;;  %v5692_v40 = vadd.f32 %v2580_v4, %v5625_v0 }
 0x5ed   : > { %4214 = vtanh.f32 %v2656_v45  ;;  %v2642_v62 = vadd.f32 %v2626_v3, %v5672_v30  ;;  %v2529_v43 = vpop.f32.mrf.mxu1  ;;  %v2582_v9 = vpop.f32.mrf.mxu0  ;;  %v2644_v27 = vadd.f32 %v2628_v42, %v5676_v48  ;;  %v2685_v45 = vmul.f32 0.5, %v5635_v36 }
 0x5ee   : > { %4216 = vtanh.f32 %v2657_v2  ;;  %v2597_v17 = vmul.f32 %v5689_v8, %v5689_v8  ;;  %v2599_v24 = vmul.f32 %v5692_v40, %v5692_v40  ;;  %v5700_v11 = vadd.f32 %v2529_v43, %v5628_v5 }
 0x5ef   : > { %4218 = vtanh.f32 %v2659_v25  ;;  %v2658_v52 = vmul.f32 0.7978846, %v2642_v62  ;;  %v5704_v20 = vadd.f32 %v2582_v9, %v5632_v6  ;;  %v2531_v28 = vpop.f32.mrf.mxu1  ;;  %v2584_v44 = vpop.f32.mrf.mxu0  ;;  %v2660_v51 = vmul.f32 0.7978846, %v2644_v27 }
 0x5f0   : > { %v2613_v54 = vmul.f32 %v2597_v17, %v5689_v8  ;;  %v2615_v12 = vmul.f32 %v2599_v24, %v5692_v40  ;;  %v2598_v21 = vmul.f32 %v5700_v11, %v5700_v11  ;;  %v5711_v26 = vadd.f32 %v2531_v28, %v5621_v59 }
 0x5f1   : > { %4220 = vtanh.f32 %v2658_v52  ;;  %v2600_v29 = vmul.f32 %v5704_v20, %v5704_v20  ;;  %v5716_v39 = vadd.f32 %v2584_v44, %v5625_v0  ;;  %v2533_v46 = vpop.f32.mrf.mxu1  ;;  %v2586_v37 = vpop.f32.mrf.mxu0  ;;  %v2686_v43 = vmul.f32 0.5, %v5645_v31 }
 0x5f2   : > { %v2629_v41 = vmul.f32 0.044715, %v2613_v54  ;;  %v2614_v55 = vmul.f32 %v2598_v21, %v5700_v11  ;;  %v2601_v58 = vmul.f32 %v5711_v26, %v5711_v26  ;;  %4222 = vtanh.f32 %v2660_v51 }
 0x5f3   : > { %v2616_v49 = vmul.f32 %v2600_v29, %v5704_v20  ;;  %v2603_v59 = vmul.f32 %v5716_v39, %v5716_v39  ;;  %v5725_v32 = vadd.f32 %v2533_v46, %v5628_v5  ;;  %v2631_v1 = vmul.f32 0.044715, %v2615_v12 }
 0x5f4   : > { %v2630_v34 = vmul.f32 0.044715, %v2614_v55  ;;  %v2617_v0 = vmul.f32 %v2601_v58, %v5711_v26  ;;  %v2645_v38 = vadd.f32 %v2629_v41, %v5689_v8  ;;  %v5737_v4 = vadd.f32 %v2586_v37, %v5632_v6 }
 0x5f5   : > { %v2632_v47 = vmul.f32 0.044715, %v2616_v49  ;;  %v2619_v63 = vmul.f32 %v2603_v59, %v5716_v39  ;;  %v2602_v61 = vmul.f32 %v5725_v32, %v5725_v32  ;;  %v2688_v36 = vmul.f32 0.5, %v5648_v14 }
 0x5f6   : > { %v2646_v7 = vadd.f32 %v2630_v34, %v5700_v11  ;;  %v2633_v2 = vmul.f32 0.044715, %v2617_v0  ;;  %v4209_v5 = vpop.eup %4208  ;;  %v2689_v17 = vmul.f32 0.5, %v5653_v18  ;;  %v2661_v24 = vmul.f32 0.7978846, %v2645_v38 }
 0x5f7   : > { %v2648_v3 = vadd.f32 %v2632_v47, %v5704_v20  ;;  %v2635_v56 = vmul.f32 0.044715, %v2619_v63  ;;  %v2618_v13 = vmul.f32 %v2602_v61, %v5725_v32  ;;  %v4211_v25 = vpop.eup %4210  ;;  %v2647_v52 = vadd.f32 %v2631_v1, %v5692_v40 }
 0x5f8   : > { %v2662_v62 = vmul.f32 0.7978846, %v2646_v7  ;;  %v2649_v42 = vadd.f32 %v2633_v2, %v5711_v26  ;;  %v2691_v21 = vmul.f32 0.5, %v5656_v22  ;;  %v2604_v31 = vmul.f32 %v5737_v4, %v5737_v4 }
 0x5f9   : > { %v4213_v9 = vpop.eup %4212  ;;  %v2651_v27 = vadd.f32 %v2635_v56, %v5716_v39  ;;  %v2664_v44 = vmul.f32 0.7978846, %v2648_v3  ;;  %v2634_v54 = vmul.f32 0.044715, %v2618_v13  ;;  %v2690_v46 = vmul.f32 0.5, %v5672_v30 }
 0x5fa   : > { %v4215_v28 = vpop.eup %4214  ;;  %v2665_v6 = vmul.f32 0.7978846, %v2649_v42  ;;  %4224 = vtanh.f32 %v2662_v62  ;;  %v2663_v41 = vmul.f32 0.7978846, %v2647_v52  ;;  %v2620_v55 = vmul.f32 %v2604_v31, %v5737_v4 }
 0x5fb   : > { %v4217_v12 = vpop.eup %4216  ;;  %v2667_v51 = vmul.f32 0.7978846, %v2651_v27  ;;  %v2650_v18 = vadd.f32 %v2634_v54, %v5725_v32  ;;  %v2702_v58 = vadd.f32 1.0, %v4213_v9  ;;  %v2701_v59 = vadd.f32 1.0, %v4209_v5 }
 0x5fc   : > { %v4219_v14 = vpop.eup %4218  ;;  %v2705_v29 = vadd.f32 1.0, %v4217_v12  ;;  %4226 = vtanh.f32 %v2665_v6  ;;  %v2636_v34 = vmul.f32 0.044715, %v2620_v55  ;;  %v2704_v37 = vadd.f32 1.0, %v4215_v28 }
 0x5fd   : > { %4228 = vtanh.f32 %v2661_v24  ;;  %v2707_v22 = vadd.f32 1.0, %v4219_v14  ;;  %v2666_v1 = vmul.f32 0.7978846, %v2650_v18  ;;  %v2703_v47 = vadd.f32 1.0, %v4211_v25 }
 0x5fe   : > { %v4221_v49 = vpop.eup %4220  ;;  %4230 = vtanh.f32 %v2664_v44  ;;  %v2721_v63 = vmul.f32 %v2705_v29, %v2689_v17  ;;  %v2692_v30 = vmul.f32 0.5, %v5676_v48  ;;  %v2652_v61 = vadd.f32 %v2636_v34, %v5737_v4 }
 0x5ff   : > { %4232 = vtanh.f32 %v2667_v51  ;;  %v2706_v0 = vadd.f32 1.0, %v4221_v49  ;;  %v4223_v38 = vpop.eup %4222  ;;  %v2718_v7 = vmul.f32 %v2702_v58, %v2686_v43  ;;  %v2717_v56 = vmul.f32 %v2701_v59, %v2685_v45 }
 0x600   : > { %4234 = vtanh.f32 %v2666_v1  ;;  %v2708_v3 = vadd.f32 1.0, %v4223_v38  ;;  %v2687_v5 = vmul.f32 0.5, %v5638_v50  ;;  %v2723_v13 = vmul.f32 %v2707_v22, %v2691_v21 }
 0x601   : > { %v2722_v2 = vmul.f32 %v2706_v0, %v2690_v46  ;;  %4236 = vtanh.f32 %v2663_v41  ;;  %v2668_v62 = vmul.f32 0.7978846, %v2652_v61  ;;  %v2720_v9 = vmul.f32 %v2704_v37, %v2688_v36 }
 0x602   : > { %v2724_v24 = vmul.f32 %v2708_v3, %v2692_v30  ;;  %v2719_v52 = vmul.f32 %v2703_v47, %v2687_v5  ;;  %v2733_v25 = vpack.c.bf16 %v2721_v63, %v2717_v56  ;;  %v2697_v36 = vmul.f32 0.5, %v5711_v26 }
 0x603   : > { %v2734_v42 = vpack.c.bf16 %v2722_v2, %v2718_v7  ;;  %4238 = vtanh.f32 %v2668_v62  ;;  %v2694_v21 = vmul.f32 0.5, %v5700_v11  ;;  %v2698_v51 = vmul.f32 0.5, %v5725_v32 }
 0x604   : > { %v2736_v17 = vpack.c.bf16 %v2724_v24, %v2720_v9  ;;  %v2735_v48 = vpack.c.bf16 %v2723_v13, %v2719_v52  ;;  %v2693_v29 = vmul.f32 0.5, %v5689_v8  ;;  %v2699_v1 = vmul.f32 0.5, %v5716_v39 }
 0x605   : > { %3157 = vmatprep.mubr.bf16.mxu1 %v2734_v42  ;;  %v2696_v11 = vmul.f32 0.5, %v5704_v20  ;;  %v2700_v32 = vmul.f32 0.5, %v5737_v4  ;;  %v2695_v0 = vmul.f32 0.5, %v5692_v40 }
 0x606   : > { %3158 = vmatmul.mubr.bf16.vlgmr.msra.gmra.mxu1 %v2733_v25  ;;  %3210 = vmatprep.mubr.bf16.mxu0 %v2736_v17 }
 0x607   : > { %v4225_v43 = vpop.eup %4224  ;;  %3211 = vmatmul.mubr.bf16.vlgmr.msra.gmra.mxu0 %v2735_v48 }
 0x608   : > { %v2710_v6 = vadd.f32 1.0, %v4225_v43 }
 0x609   : > { %v4227_v27 = vpop.eup %4226 }
 0x60a   : > { %v4229_v45 = vpop.eup %4228  ;;  %v2713_v50 = vadd.f32 1.0, %v4227_v27  ;;  %v2726_v46 = vmul.f32 %v2710_v6, %v2694_v21 }
 0x60b   : > { %v4231_v28 = vpop.eup %4230  ;;  %v2709_v12 = vadd.f32 1.0, %v4229_v45 }
 0x60c   : > { %v4233_v44 = vpop.eup %4232  ;;  %v2729_v18 = vmul.f32 %v2713_v50, %v2697_v36  ;;  %v2712_v58 = vadd.f32 1.0, %v4231_v28 }
 0x60d   : > { %v4235_v54 = vpop.eup %4234  ;;  %v2715_v55 = vadd.f32 1.0, %v4233_v44  ;;  %v2725_v49 = vmul.f32 %v2709_v12, %v2693_v29 }
 0x60e   : > { %v2714_v31 = vadd.f32 1.0, %v4235_v54  ;;  %v4237_v14 = vpop.eup %4236  ;;  %v2728_v38 = vmul.f32 %v2712_v58, %v2696_v11 }
 0x60f   : > { %v2711_v26 = vadd.f32 1.0, %v4237_v14  ;;  %v2737_v8 = vpack.c.bf16 %v2729_v18, %v2725_v49  ;;  %v2731_v37 = vmul.f32 %v2715_v55, %v2699_v1 }
 0x610   : > { %v2730_v41 = vmul.f32 %v2714_v31, %v2698_v51  ;;  %v4239_v59 = vpop.eup %4238 }
 0x611   : > { %v2716_v34 = vadd.f32 1.0, %v4239_v59  ;;  %v2727_v39 = vmul.f32 %v2711_v26, %v2695_v0 }
 0x612   : > { %v2738_v22 = vpack.c.bf16 %v2730_v41, %v2726_v46 }
 0x613   : > { %v2732_v47 = vmul.f32 %v2716_v34, %v2700_v32  ;;  %v2739_v30 = vpack.c.bf16 %v2731_v37, %v2727_v39 }
 0x614   : > { %3167 = vmatprep.mubr.bf16.mxu1 %v2738_v22 }
 0x615   : > { %3168 = vmatmul.mubr.bf16.gmra.mxu1 %v2737_v8  ;;  %v2740_v63 = vpack.c.bf16 %v2732_v47, %v2728_v38 }
 0x617   : > { %3220 = vmatprep.mubr.bf16.mxu0 %v2740_v63 }
 0x618   : > { %3221 = vmatmul.mubr.bf16.gmra.mxu0 %v2739_v30 }
 0x619   : > { %4253 = shalt.err (!%p4250_p3)
}
 0x61a   : > { %s4254_s18 = scalar_lea.hbm %s5768_s26, 512  ;;  %s4258_s19 = scalar_lea.hbm %s5886_s15, 1024 }
 0x61b   : > { %p4255_p4 = scmp.ne.s32.totalorder %s5768_s26, %s4254_s18  ;;  %p4259_p9 = scmp.lt.s32.totalorder %s5768_s26, %s5886_s15 }
 0x61c   : > { %p4260_p10 = scmp.lt.s32.totalorder %s4258_s19, %s4254_s18 }
 0x61d   : > { %p4256_p7 = pnand %p4255_p4, %p4460_p5 }
 0x61e   : > { %p4261_p11 = por %p4260_p10, %p4259_p9 }
 0x61f   : > { %p4257_p8 = pneg %p4256_p7 }
 0x621   : > { %p4262_p12 = pnand %p4261_p11, %p4257_p8 }
 0x623   : > { %4265 = shalt.err (!%p4262_p12)
}
 0x624   : > { %s5897_s16 = smov 128   ;;  %s4335_s23 = smov 8   ;;  %v3239_v4 = vld [vmem:[%s5885_s14] sm:$0x3] }
 0x625   : > { %3720 = dma.vmem_to_hbm [thread:$0]  (%p4460_p5), %s5771_s28, 512, %s5768_s26, %s3288_s30, %s5897_s16, %s5897_s16, %s4335_s23   ;;  %v3244_v5 = vrot.slane %v3239_v4, %v4495_v15  ;;  %v3248_v62 = vrot.slane %v3239_v4, %v4498_v16 }
 0x626   : > { %s5909_s26 = sshll.u32 %s5122_s20, 5  ;;  %s5910_s18 = sshll.u32 %s4443_s25, 9 }
 0x627   : > { %s5810_s28 = scalar_lea.vmem [#allocation4], %s5909_s26  ;;  %s5911_s19 = sld [smem:[#allocation15_spill]] }
 0x628   : > { %s3324_s30 = sshll.u32 %s5810_s28, 4  ;;  %s3293_s27 = scalar_lea.sflag [#allocation5], %s5122_s20  ;;  %s5827_s30 = int_to_ptr.vmem [resolvable:$true] %s3324_s30 }
 0x629   : > { %s4266_s24 = scalar_lea.vmem %s5827_s30, 512  ;;  %s4336_s26 = smov [#allocation4]  }
 0x62a   : > { %p4267_p13 = scmp.ne.s32.totalorder %s5827_s30, %s4266_s24  ;;  %s4270_s16 = sshll.u32 %s4336_s26, 4  ;;  %s4271_s16 = int_to_ptr.vmem [resolvable:$false] %s4270_s16 }
 0x62b   : > { %s4272_s25 = scalar_lea.vmem %s4271_s16, 1024  ;;  %p4273_p2 = scmp.lt.s32.totalorder %s5827_s30, %s4271_s16 }
 0x62c   : > { %p4268_p0 = pnand %p4267_p13, %p4460_p5  ;;  %p4274_p3 = scmp.lt.s32.totalorder %s4272_s25, %s4266_s24 }
 0x62d   : > { %s5825_s21 = scalar_lea.hbm %s5911_s19, %s5910_s18 }
 0x62e   : > { %p4269_p1 = pneg %p4268_p0  ;;  %p4275_p4 = por %p4274_p3, %p4273_p2 }
 0x630   : > { %p4276_p7 = pnand %p4275_p4, %p4269_p1 }
 0x6c6   : > { %v3159_v40 = vpop.f32.mrf.mxu1 }
 0x6c7   : > { %v3212_v20 = vpop.f32.mrf.mxu0 }
 0x6c8   : > { %v3161_v61 = vpop.f32.mrf.mxu1  ;;  %v3213_v7 = vadd.f32 %v3212_v20, %v3159_v40 }
 0x6c9   : > { %v3214_v2 = vpop.f32.mrf.mxu0 }
 0x6ca   : > { %v3163_v3 = vpop.f32.mrf.mxu1  ;;  %v3231_v56 = vadd.f32 %v3213_v7, %v5129_v35  ;;  %v3215_v13 = vadd.f32 %v3214_v2, %v3161_v61 }
 0x6cb   : > { %v3216_v42 = vpop.f32.mrf.mxu0 }
 0x6cc   : > { %v3165_v9 = vpop.f32.mrf.mxu1  ;;  %v3232_v24 = vadd.f32 %v3215_v13, %v5131_v10  ;;  %v3217_v52 = vadd.f32 %v3216_v42, %v3163_v3  ;;  %v3251_v17 = vadd.f32 %v3244_v5, %v3231_v56 }
 0x6cd   : > { %v3218_v25 = vpop.f32.mrf.mxu0 }
 0x6ce   : > { %v3252_v48 = vadd.f32 %v3248_v62, %v3232_v24  ;;  %v3233_v43 = vadd.f32 %v3217_v52, %v5144_v23  ;;  %v3219_v27 = vadd.f32 %v3218_v25, %v3165_v9 }
 0x6d0   : > { %v3712_v45 = vpack.c.bf16 %v3252_v48, %v3251_v17  ;;  %v3234_v28 = vadd.f32 %v3219_v27, %v5146_v19  ;;  %v3253_v15 = vadd.f32 %v3244_v5, %v3233_v43 }
 0x6d2   : > { %3283 = vst [vmem:[%s5810_s28] sm:$0xff] %v3712_v45  ;;  %v3254_v16 = vadd.f32 %v3248_v62, %v3234_v28 }
 0x6d4   : > { %v3713_v35 = vpack.c.bf16 %v3254_v16, %v3253_v15 }
 0x6d5   : > { %v3169_v10 = vpop.f32.mrf.mxu1 }
 0x6d6   : > { %3284 = vst [vmem:[%s5810_s28 + $0x8] sm:$0xff] %v3713_v35 }
 0x6d7   : > { %v3171_v50 = vpop.f32.mrf.mxu1 }
 0x6d8   : > { %v3222_v44 = vpop.f32.mrf.mxu0 }
 0x6d9   : > { %v3173_v6 = vpop.f32.mrf.mxu1  ;;  %v3223_v23 = vadd.f32 %v3222_v44, %v3169_v10 }
 0x6da   : > { %v3224_v54 = vpop.f32.mrf.mxu0 }
 0x6db   : > { %v3235_v19 = vadd.f32 %v3223_v23, %v5155_v57  ;;  %v3225_v36 = vadd.f32 %v3224_v54, %v3171_v50  ;;  %v3175_v21 = vpop.f32.mrf.mxu1 }
 0x6dc   : > { %v3226_v12 = vpop.f32.mrf.mxu0 }
 0x6dd   : > { %v3236_v51 = vadd.f32 %v3225_v36, %v5157_v53  ;;  %v3227_v31 = vadd.f32 %v3226_v12, %v3173_v6  ;;  %v3255_v29 = vadd.f32 %v3244_v5, %v3235_v19 }
 0x6de   : > { %v3228_v14 = vpop.f32.mrf.mxu0 }
 0x6df   : > { %v3256_v18 = vadd.f32 %v3248_v62, %v3236_v51  ;;  %v3237_v46 = vadd.f32 %v3227_v31, %v5166_v33  ;;  %v3229_v41 = vadd.f32 %v3228_v14, %v3175_v21 }
 0x6e1   : > { %v3714_v55 = vpack.c.bf16 %v3256_v18, %v3255_v29  ;;  %v3238_v58 = vadd.f32 %v3229_v41, %v5168_v60  ;;  %v3257_v57 = vadd.f32 %v3244_v5, %v3237_v46 }
 0x6e3   : > { %3285 = vst [vmem:[%s5810_s28 + $0x10] sm:$0xff] %v3714_v55  ;;  %v3258_v49 = vadd.f32 %v3248_v62, %v3238_v58 }
 0x6e5   : > { %v3715_v59 = vpack.c.bf16 %v3258_v49, %v3257_v57 }
 0x6e7   : > { %3286 = vst [vmem:[%s5810_s28 + $0x18] sm:$0xff] %v3715_v59 }
 0x6e8   : > { %4279 = shalt.err (!%p4276_p7)
}
 0x6e9   : > { %s4280_s28 = scalar_lea.hbm %s5825_s21, 512  ;;  %s4284_s29 = scalar_lea.hbm %s5911_s19, 1024 }
 0x6ea   : > { %p4281_p8 = scmp.ne.s32.totalorder %s5825_s21, %s4280_s28  ;;  %p4285_p11 = scmp.lt.s32.totalorder %s5825_s21, %s5911_s19 }
 0x6eb   : > { %p4286_p12 = scmp.lt.s32.totalorder %s4284_s29, %s4280_s28 }
 0x6ec   : > { %p4282_p9 = pnand %p4281_p8, %p4460_p5 }
 0x6ed   : > { %p4287_p13 = por %p4286_p12, %p4285_p11 }
 0x6ee   : > { %p4283_p10 = pneg %p4282_p9 }
 0x6f0   : > { %p4288_p0 = pnand %p4287_p13, %p4283_p10 }
 0x6f2   : > { %4291 = shalt.err (!%p4288_p0)
}
 0x6f3   : > { %s5912_s16 = smov 128  }
 0x6f4   : > { %3721 = dma.vmem_to_hbm [thread:$0]  (%p4460_p5), %s5827_s30, 512, %s5825_s21, %s3293_s27, %s5912_s16, %s5912_s16, %s4335_s23  }
 0x6f5 PF: > { %s5913_s24 = sld [smem:[#allocation10_spill]] }
 0x6f6   : > { %s5914_s25 = sld [smem:[#allocation8_spill]] }
 0x6fb   : > { %p3731_p1 = scmp.ge.s32.totalorder %s5913_s24, 2 }
 0x6fc   : > { %s3339_s18 = sand.u32 1, %s5914_s25  }
 0x6fd   : > { %p3725_p2 = pnand %p3731_p1, %p4464_p6  ;;  %s3340_s28 = scalar_lea.sflag [#allocation3], %s3339_s18 }
 0x6ff   : > { %p3726_p3 = pneg %p3725_p2 }
 0x701   : > { %4309 = dma.done.wait (%p3726_p3), %s3340_s28, 512  }
 0x702   : > { %4311 = vsyncadd (%p3726_p3), %s3340_s28, 4294966784  ;;  %s3349_s29 = scalar_lea.sflag [#allocation5], %s3339_s18 }
 0x703   : > { %4313 = dma.done.wait (%p3726_p3), %s3349_s29, 512  }
 0x704   : > { %4315 = vsyncadd (%p3726_p3), %s3349_s29, 4294966784  ;;  %s5916_s24 = sld [smem:[#allocation11_spill]]  ;;  %s5919_s21 = smov %s4322_s22 }
 0x705   : > { %s5917_s0 = sld [smem:[#allocation9_spill]] }
 0x706   : > { %s5918_s23 = sld [smem:[#allocation12_spill]] }
 0x70a   : > { %p30_p5 = scmp.ge.s32.totalorder %s5916_s24, 4  }
 0x70b   : > { %s5920_s22 = smov %s5917_s0 }
 0x70c   :  { %32 = sbr.rel (!%p30_p5) target bundleno = 8 (0x8), region = 132 }
 0x711   :  { %3354 = vsyncpa [#allocation3], 1 }
 0x712   :  { %3356 = vsyncpa [#allocation3 + $0x1], 1 }
 0x713   :  { %3357 = vsyncpa [#allocation5], 1 }
 0x714   :  { %3359 = vsyncpa [#allocation5 + $0x1], 1 }

</bundles_post_ra>
